<compile_context>
chip_gen: v7x
topology: tpu7x:2x2x1
jax: 0.10.0
libtpu: 0.0.40
codegen_flags: <defaults>
</compile_context>

<pallas_src>
import functools

import jax
import jax.numpy as jnp
from jax.experimental import pallas as pl
from jax.experimental.pallas import tpu as pltpu


def gdc_kernel(x_ref, wdw_ref, wlin_ref,
               g1_ref, b1_ref, m1_ref, v1_ref,
               g2_ref, b2_ref, m2_ref, v2_ref,
               o_ref, *, eps):
    """Full-batch GDC forward.

    x_ref   : (B, S, C)  VMEM   S = H*W = 49, C = 512 on the lane axis
    wdw_ref : (S, C)     VMEM   depthwise conv weight, spatial-major
    wlin_ref: (C, E)     VMEM   Linear weight, pre-transposed
    g1..v1  : (1, C)     VMEM   BatchNorm2d gamma/beta/running_mean/running_var
    g2..v2  : (1, E)     VMEM   BatchNorm1d gamma/beta/running_mean/running_var
    o_ref   : (B, E)     VMEM
    """
    x = x_ref[...]                                    # (B, S, C)
    w_dw = wdw_ref[...]                               # (S, C)

    # Depthwise 7x7 VALID conv on a 7x7 input == per-channel spatial dot product.
    pooled = jnp.sum(x * w_dw[None, :, :], axis=1)    # (B, C)

    # BatchNorm2d (eval mode, running stats) -> per-channel affine.
    scale1 = g1_ref[...] * jax.lax.rsqrt(v1_ref[...] + eps)       # (1, C)
    y = (pooled - m1_ref[...]) * scale1 + b1_ref[...]             # (B, C)

    # Flatten() is a no-op here: spatial was already reduced to 1x1.

    # Linear(512, E, bias=False).  Single tiny matmul; HIGHEST keeps the
    # 1e-3 verification robust at negligible cost for this shape.
    emb = jnp.dot(y, wlin_ref[...],
                  precision=jax.lax.Precision.HIGHEST,
                  preferred_element_type=jnp.float32)             # (B, E)

    # BatchNorm1d (eval mode, running stats) -> per-feature affine.
    scale2 = g2_ref[...] * jax.lax.rsqrt(v2_ref[...] + eps)       # (1, E)
    o_ref[...] = ((emb - m2_ref[...]) * scale2 + b2_ref[...]).astype(o_ref.dtype)


def gdc_pallas(x, w_dw, w_lin, g1, b1, m1, v1, g2, b2, m2, v2, *, eps=1e-5):
    B, C, H, W = x.shape
    E = w_lin.shape[0]
    S = H * W

    # Lane-dense layout plumbing: channels -> lane axis (512 = 4 * 128).
    x_t = jnp.transpose(x.reshape(B, C, S), (0, 2, 1)).astype(jnp.float32)   # (B, S, C)
    wdw_t = jnp.transpose(w_dw.reshape(C, S), (1, 0)).astype(jnp.float32)    # (S, C)
    wlin_t = jnp.transpose(w_lin, (1, 0)).astype(jnp.float32)                # (C, E)

    row = lambda v: v.reshape(1, -1).astype(jnp.float32)

    kern = functools.partial(gdc_kernel, eps=eps)
    vmem_spec = lambda: pl.BlockSpec(memory_space=pltpu.MemorySpace.VMEM)
    return pl.pallas_call(
        kern,
        out_shape=jax.ShapeDtypeStruct((B, E), jnp.float32),
        in_specs=[vmem_spec() for _ in range(11)],
        out_specs=vmem_spec(),
    )(x_t, wdw_t, wlin_t,
      row(g1), row(b1), row(m1), row(v1),
      row(g2), row(b2), row(m2), row(v2))


def gdc_reference(x, w_dw, w_lin, g1, b1, m1, v1, g2, b2, m2, v2, *, eps=1e-5):
    """Pure-JAX reference mirroring the PyTorch forward (eval mode)."""
    hp = jax.lax.Precision.HIGHEST
    conv = jax.lax.conv_general_dilated(
        x, w_dw, window_strides=(1, 1), padding="VALID",
        dimension_numbers=("NCHW", "OIHW", "NCHW"),
        feature_group_count=x.shape[1], precision=hp)                # (B, C, 1, 1)
    bn1 = ((conv - m1[None, :, None, None])
           / jnp.sqrt(v1[None, :, None, None] + eps)
           * g1[None, :, None, None] + b1[None, :, None, None])
    flat = bn1.reshape(x.shape[0], -1)                               # (B, C)
    lin = jnp.dot(flat, w_lin.T, precision=hp)                       # (B, E)
    return (lin - m2) / jnp.sqrt(v2 + eps) * g2 + b2                 # (B, E)


if __name__ == "__main__":
    # GDC hard-codes 512 channels and a 7x7 depthwise kernel with VALID padding,
    # so the spatial input must be 7x7.  Keep batch / embedding small.
    B, C, H, W = 2, 512, 7, 7
    E = 128                                   # embedding_size

    key = jax.random.PRNGKey(0)
    ks = jax.random.split(key, 11)
    x = jax.random.normal(ks[0], (B, C, H, W), dtype=jnp.float32)
    w_dw = jax.random.normal(ks[1], (C, 1, H, W), dtype=jnp.float32) * 0.05
    w_lin = jax.random.normal(ks[2], (E, C), dtype=jnp.float32) / jnp.sqrt(C)
    g1 = 1.0 + 0.1 * jax.random.normal(ks[3], (C,), dtype=jnp.float32)
    b1 = 0.1 * jax.random.normal(ks[4], (C,), dtype=jnp.float32)
    m1 = 0.1 * jax.random.normal(ks[5], (C,), dtype=jnp.float32)
    v1 = jax.random.uniform(ks[6], (C,), dtype=jnp.float32, minval=0.5, maxval=1.5)
    g2 = 1.0 + 0.1 * jax.random.normal(ks[7], (E,), dtype=jnp.float32)
    b2 = 0.1 * jax.random.normal(ks[8], (E,), dtype=jnp.float32)
    m2 = 0.1 * jax.random.normal(ks[9], (E,), dtype=jnp.float32)
    v2 = jax.random.uniform(ks[10], (E,), dtype=jnp.float32, minval=0.5, maxval=1.5)

    out = gdc_pallas(x, w_dw, w_lin, g1, b1, m1, v1, g2, b2, m2, v2)
    out = jax.block_until_ready(out)

    ref = gdc_reference(x, w_dw, w_lin, g1, b1, m1, v1, g2, b2, m2, v2)
    assert out.shape == (B, E), out.shape
    assert jnp.allclose(out, ref, rtol=1e-3, atol=1e-3), (
        float(jnp.max(jnp.abs(out - ref))))

    print("KERNEL_OK")
</pallas_src>

<mosaic_0001>
module attributes {stable_mosaic.version = 11 : i64} {
  func.func @gdc_kernel(%arg0: memref<2x49x512xf32, #tpu.memory_space<vmem>>, %arg1: memref<49x512xf32, #tpu.memory_space<vmem>>, %arg2: memref<512x128xf32, #tpu.memory_space<vmem>>, %arg3: memref<1x512xf32, #tpu.memory_space<vmem>>, %arg4: memref<1x512xf32, #tpu.memory_space<vmem>>, %arg5: memref<1x512xf32, #tpu.memory_space<vmem>>, %arg6: memref<1x512xf32, #tpu.memory_space<vmem>>, %arg7: memref<1x128xf32, #tpu.memory_space<vmem>>, %arg8: memref<1x128xf32, #tpu.memory_space<vmem>>, %arg9: memref<1x128xf32, #tpu.memory_space<vmem>>, %arg10: memref<1x128xf32, #tpu.memory_space<vmem>>, %arg11: memref<2x128xf32, #tpu.memory_space<vmem>>) attributes {dimension_semantics = [], scalar_prefetch = 0 : i64, scratch_operands = 0 : i64, tpu.core_type = #tpu.core_type<tc>} {
    %c0 = arith.constant 0 : index
    %c0_0 = arith.constant 0 : index
    %c0_1 = arith.constant 0 : index
    %0 = vector.load %arg0[%c0, %c0_0, %c0_1] : memref<2x49x512xf32, #tpu.memory_space<vmem>>, vector<2x49x512xf32>
    %c0_2 = arith.constant 0 : index
    %c0_3 = arith.constant 0 : index
    %1 = vector.load %arg1[%c0_2, %c0_3] : memref<49x512xf32, #tpu.memory_space<vmem>>, vector<49x512xf32>
    %2 = vector.shape_cast %1 : vector<49x512xf32> to vector<1x49x512xf32>
    %3 = vector.broadcast %2 : vector<1x49x512xf32> to vector<2x49x512xf32>
    %4 = arith.mulf %0, %3 : vector<2x49x512xf32>
    %cst = arith.constant dense<0.000000e+00> : vector<2x512xf32>
    %5 = vector.multi_reduction <add>, %4, %cst [1] : vector<2x49x512xf32> to vector<2x512xf32>
    %c0_4 = arith.constant 0 : index
    %c0_5 = arith.constant 0 : index
    %6 = vector.load %arg3[%c0_4, %c0_5] : memref<1x512xf32, #tpu.memory_space<vmem>>, vector<1x512xf32>
    %c0_6 = arith.constant 0 : index
    %c0_7 = arith.constant 0 : index
    %7 = vector.load %arg6[%c0_6, %c0_7] : memref<1x512xf32, #tpu.memory_space<vmem>>, vector<1x512xf32>
    %cst_8 = arith.constant 9.99999974E-6 : f32
    %8 = vector.broadcast %cst_8 : f32 to vector<1x512xf32>
    %9 = arith.addf %7, %8 : vector<1x512xf32>
    %10 = math.rsqrt %9 : vector<1x512xf32>
    %11 = arith.mulf %6, %10 : vector<1x512xf32>
    %c0_9 = arith.constant 0 : index
    %c0_10 = arith.constant 0 : index
    %12 = vector.load %arg5[%c0_9, %c0_10] : memref<1x512xf32, #tpu.memory_space<vmem>>, vector<1x512xf32>
    %13 = vector.broadcast %12 : vector<1x512xf32> to vector<2x512xf32>
    %14 = arith.subf %5, %13 : vector<2x512xf32>
    %15 = vector.broadcast %11 : vector<1x512xf32> to vector<2x512xf32>
    %16 = arith.mulf %14, %15 : vector<2x512xf32>
    %c0_11 = arith.constant 0 : index
    %c0_12 = arith.constant 0 : index
    %17 = vector.load %arg4[%c0_11, %c0_12] : memref<1x512xf32, #tpu.memory_space<vmem>>, vector<1x512xf32>
    %18 = vector.broadcast %17 : vector<1x512xf32> to vector<2x512xf32>
    %19 = arith.addf %16, %18 : vector<2x512xf32>
    %c0_13 = arith.constant 0 : index
    %c0_14 = arith.constant 0 : index
    %20 = vector.load %arg2[%c0_13, %c0_14] : memref<512x128xf32, #tpu.memory_space<vmem>>, vector<512x128xf32>
    %cst_15 = arith.constant dense<0.000000e+00> : vector<2x128xf32>
    %21 = tpu.matmul %19, %20, %cst_15 {dimension_numbers = #tpu.dot_dimension_numbers<[1], [0], [0], [1], [0, 0, 1, 1], [], []>, precision = #tpu.contract_precision<fp32>} : vector<2x512xf32>, vector<512x128xf32>, vector<2x128xf32> -> vector<2x128xf32>
    %c0_16 = arith.constant 0 : index
    %c0_17 = arith.constant 0 : index
    %22 = vector.load %arg7[%c0_16, %c0_17] : memref<1x128xf32, #tpu.memory_space<vmem>>, vector<1x128xf32>
    %c0_18 = arith.constant 0 : index
    %c0_19 = arith.constant 0 : index
    %23 = vector.load %arg10[%c0_18, %c0_19] : memref<1x128xf32, #tpu.memory_space<vmem>>, vector<1x128xf32>
    %cst_20 = arith.constant 9.99999974E-6 : f32
    %24 = vector.broadcast %cst_20 : f32 to vector<1x128xf32>
    %25 = arith.addf %23, %24 : vector<1x128xf32>
    %26 = math.rsqrt %25 : vector<1x128xf32>
    %27 = arith.mulf %22, %26 : vector<1x128xf32>
    %c0_21 = arith.constant 0 : index
    %c0_22 = arith.constant 0 : index
    %28 = vector.load %arg9[%c0_21, %c0_22] : memref<1x128xf32, #tpu.memory_space<vmem>>, vector<1x128xf32>
    %29 = vector.broadcast %28 : vector<1x128xf32> to vector<2x128xf32>
    %30 = arith.subf %21, %29 : vector<2x128xf32>
    %31 = vector.broadcast %27 : vector<1x128xf32> to vector<2x128xf32>
    %32 = arith.mulf %30, %31 : vector<2x128xf32>
    %c0_23 = arith.constant 0 : index
    %c0_24 = arith.constant 0 : index
    %33 = vector.load %arg8[%c0_23, %c0_24] : memref<1x128xf32, #tpu.memory_space<vmem>>, vector<1x128xf32>
    %34 = vector.broadcast %33 : vector<1x128xf32> to vector<2x128xf32>
    %35 = arith.addf %32, %34 : vector<2x128xf32>
    %c0_25 = arith.constant 0 : index
    %c0_26 = arith.constant 0 : index
    %36 = vector.load %arg11[%c0_25, %c0_26] : memref<2x128xf32, #tpu.memory_space<vmem>>, vector<2x128xf32>
    tpu.vector_store %arg11[%c0_25, %c0_26], %35 {strides = array<i32>} : memref<2x128xf32, #tpu.memory_space<vmem>>, vector<2x128xf32>,
    return
  }
}

</mosaic_0001>

<bundles_post_ra>
// kernel: tpu_custom_call.1
= control target key start
LH: loop header
LB: loop body
LE: loop exit
PB: predicated region body
PF: predicated region fallthrough
CT: control target
= control target key end

     0   :  { %vm184_vm0 = vcmask 1040384   ;;  %s4815_s0 = inlined_call_operand.vmem [shape: f32[2,49,512], index: 0, kind: input, shape index: {}]   ;;  %s4816_s1 = inlined_call_operand.vmem [shape: f32[49,512], index: 1, kind: input, shape index: {}]   ;;  %s4817_s2 = inlined_call_operand.vmem [shape: f32[512,128], index: 2, kind: input, shape index: {}]   ;;  %s4818_s3 = inlined_call_operand.vmem [shape: f32[1,512], index: 3, kind: input, shape index: {}]   ;;  %s4819_s4 = inlined_call_operand.vmem [shape: f32[1,512], index: 4, kind: input, shape index: {}]   ;;  %s4820_s5 = inlined_call_operand.vmem [shape: f32[1,512], index: 5, kind: input, shape index: {}]   ;;  %s4821_s6 = inlined_call_operand.vmem [shape: f32[1,512], index: 6, kind: input, shape index: {}]   ;;  %s4822_s7 = inlined_call_operand.vmem [shape: f32[1,128], index: 7, kind: input, shape index: {}]   ;;  %s4823_s8 = inlined_call_operand.vmem [shape: f32[1,128], index: 8, kind: input, shape index: {}]   ;;  %s4824_s9 = inlined_call_operand.vmem [shape: f32[1,128], index: 9, kind: input, shape index: {}]   ;;  %s4825_s10 = inlined_call_operand.vmem [shape: f32[1,128], index: 10, kind: input, shape index: {}]   ;;  %s4826_s11 = inlined_call_operand.hbm [shape: f32[2,128], index: 11, kind: output, shape index: {}]  }
   0x1   :  { %v394_v0 = vld [vmem:[%s4817_s2 + $0x80] sm:$0xff]  ;;  %v395_v1 = vld [vmem:[%s4817_s2 + $0x88] sm:$0xff]  ;;  %v396_v7 = vld [vmem:[%s4817_s2 + $0x90] sm:$0xff] }
   0x2   :  { %v378_v2 = vld [vmem:[%s4817_s2] sm:$0xff]  ;;  %v512_v3 = vand.u32 4294901760, %v394_v0  ;;  %v515_v4 = vand.u32 4294901760, %v395_v1  ;;  %v379_v5 = vld [vmem:[%s4817_s2 + $0x8] sm:$0xff]  ;;  %v397_v8 = vld [vmem:[%s4817_s2 + $0x98] sm:$0xff]  ;;  %v518_v10 = vand.u32 4294901760, %v396_v7 }
   0x3   :  { %v464_v6 = vand.u32 4294901760, %v378_v2  ;;  %v467_v9 = vand.u32 4294901760, %v379_v5  ;;  %v521_v11 = vand.u32 4294901760, %v397_v8  ;;  %v380_v16 = vld [vmem:[%s4817_s2 + $0x10] sm:$0xff]  ;;  %v381_v17 = vld [vmem:[%s4817_s2 + $0x18] sm:$0xff]  ;;  %v398_v38 = vld [vmem:[%s4817_s2 + $0xa0] sm:$0xff] }
   0x4   :  { %v3144_v12 = vpack.c.bf16 %v515_v4, %v512_v3  ;;  %v3148_v14 = vsub.f32 %v394_v0, %v512_v3  ;;  %v3150_v15 = vsub.f32 %v395_v1, %v515_v4  ;;  %v3164_v21 = vsub.f32 %v396_v7, %v518_v10  ;;  %v399_v39 = vld [vmem:[%s4817_s2 + $0xa8] sm:$0xff]  ;;  %v382_v48 = vld [vmem:[%s4817_s2 + $0x20] sm:$0xff]  ;;  %v400_v58 = vld [vmem:[%s4817_s2 + $0xb0] sm:$0xff] }
   0x5   :  { %v3146_v13 = vsub.f32 %v378_v2, %v464_v6  ;;  %v3158_v18 = vpack.c.bf16 %v467_v9, %v464_v6  ;;  %v3160_v19 = vsub.f32 %v379_v5, %v467_v9  ;;  %v3162_v20 = vpack.c.bf16 %v521_v11, %v518_v10  ;;  %v383_v53 = vld [vmem:[%s4817_s2 + $0x28] sm:$0xff]  ;;  %v401_v63 = vld [vmem:[%s4817_s2 + $0xb8] sm:$0xff] }
   0x6   :  { %4978 = vst [vmem:[#allocation5_spill] sm:$0xff] %v3144_v12  ;;  %4979 = vst [vmem:[#allocation6_spill] sm:$0xff] %v3148_v14  ;;  %2653 = vmatprep.subr.bf16.mxu0 %v3144_v12  ;;  %v4832_v22 = vand.u32 4294901760, %v3148_v14  ;;  %v4831_v23 = vand.u32 4294901760, %v3150_v15  ;;  %v3170_v25 = vsub.f32 %v397_v8, %v521_v11  ;;  %v470_v27 = vand.u32 4294901760, %v380_v16  ;;  %v384_v8 = vld [vmem:[%s4817_s2 + $0x30] sm:$0xff] }
   0x7   :  { %4980 = vst [vmem:[#allocation7_spill] sm:$0xff] %v3150_v15  ;;  %4981 = vst [vmem:[#allocation8_spill] sm:$0xff] %v3158_v18  ;;  %v4830_v24 = vand.u32 4294901760, %v3146_v13  ;;  %2655 = vmatpush3.bf16.msra.mxu0 %v3158_v18  ;;  %v4829_v26 = vand.u32 4294901760, %v3160_v19  ;;  %v473_v28 = vand.u32 4294901760, %v381_v17  ;;  %v4828_v29 = vand.u32 4294901760, %v3164_v21 }
   0x8   :  { %4982 = vst [vmem:[#allocation9_spill] sm:$0xff] %v3162_v20  ;;  %v691_v30 = vsub.f32 %v3148_v14, %v4832_v22  ;;  %v698_v31 = vsub.f32 %v3150_v15, %v4831_v23  ;;  %2657 = vmatprep.subr.bf16.mxu0 %v3162_v20  ;;  %v4827_v33 = vand.u32 4294901760, %v3170_v25  ;;  %v3191_v36 = vsub.f32 %v380_v16, %v470_v27 }
   0x9   :  { %v579_v32 = vsub.f32 %v3146_v13, %v4830_v24  ;;  %v586_v34 = vsub.f32 %v3160_v19, %v4829_v26  ;;  %v3189_v35 = vpack.c.bf16 %v473_v28, %v470_v27  ;;  %v3193_v37 = vsub.f32 %v381_v17, %v473_v28  ;;  %v385_v17 = vld [vmem:[%s4817_s2 + $0x38] sm:$0xff] }
   0xa   :  { %v692_v40 = vand.u32 4294901760, %v691_v30  ;;  %v699_v41 = vand.u32 4294901760, %v698_v31  ;;  %v705_v43 = vsub.f32 %v3164_v21, %v4828_v29  ;;  %v712_v45 = vsub.f32 %v3170_v25, %v4827_v33 }
   0xb   :  { %4983 = vst [vmem:[#allocation10_spill] sm:$0xff] %v3189_v35  ;;  %v580_v42 = vand.u32 4294901760, %v579_v32  ;;  %v587_v44 = vand.u32 4294901760, %v586_v34  ;;  %2659 = vmatpush3.bf16.msra.mxu0 %v3189_v35  ;;  %v4855_v46 = vand.u32 4294901760, %v3191_v36  ;;  %v4851_v47 = vand.u32 4294901760, %v3193_v37  ;;  %v56_v35 = vld [vmem:[%s4815_s0 + $0x88] sm:$0xff] }
   0xc   :  { %v2684_v49 = vpack.c.bf16 %v699_v41, %v692_v40  ;;  %v706_v50 = vand.u32 4294901760, %v705_v43  ;;  %v524_v51 = vand.u32 4294901760, %v398_v38  ;;  %v527_v52 = vand.u32 4294901760, %v399_v39 }
   0xd   :  { %v2686_v54 = vpack.c.bf16 %v587_v44, %v580_v42  ;;  %v713_v55 = vand.u32 4294901760, %v712_v45  ;;  %v593_v56 = vsub.f32 %v3191_v36, %v4855_v46  ;;  %v600_v57 = vsub.f32 %v3193_v37, %v4851_v47 }
   0xe   :  { %2685 = vmatprep.subr.bf16.mxu1 %v2684_v49  ;;  %v3225_v59 = vpack.c.bf16 %v527_v52, %v524_v51  ;;  %v3227_v60 = vsub.f32 %v398_v38, %v524_v51  ;;  %v3229_v61 = vsub.f32 %v399_v39, %v527_v52  ;;  %v476_v62 = vand.u32 4294901760, %v382_v48  ;;  %v403_v51 = vld [vmem:[%s4817_s2 + $0xc8] sm:$0xff]  ;;  %v386_v52 = vld [vmem:[%s4817_s2 + $0x40] sm:$0xff] }
   0xf   :  { %2687 = vmatpush3.bf16.msra.mxu1 %v2686_v54  ;;  %v2688_v0 = vpack.c.bf16 %v713_v55, %v706_v50  ;;  %v594_v1 = vand.u32 4294901760, %v593_v56  ;;  %v601_v2 = vand.u32 4294901760, %v600_v57  ;;  %v479_v3 = vand.u32 4294901760, %v383_v53  ;;  %v402_v50 = vld [vmem:[%s4817_s2 + $0xc0] sm:$0xff] }
  0x10   :  { %4984 = vst [vmem:[#allocation11_spill] sm:$0xff] %v3225_v59  ;;  %2661 = vmatprep.subr.bf16.mxu0 %v3225_v59  ;;  %v3235_v4 = vsub.f32 %v382_v48, %v476_v62  ;;  %v4850_v5 = vand.u32 4294901760, %v3227_v60  ;;  %v4848_v6 = vand.u32 4294901760, %v3229_v61  ;;  %v530_v7 = vand.u32 4294901760, %v400_v58 }
  0x11   :  { %2689 = vmatprep.subr.bf16.mxu1 %v2688_v0  ;;  %v2690_v9 = vpack.c.bf16 %v601_v2, %v594_v1  ;;  %v3242_v10 = vpack.c.bf16 %v479_v3, %v476_v62  ;;  %v3244_v11 = vsub.f32 %v383_v53, %v479_v3  ;;  %v533_v16 = vand.u32 4294901760, %v401_v63  ;;  %v387_v3 = vld [vmem:[%s4817_s2 + $0x48] sm:$0xff] }
  0x12   :  { %v719_v27 = vsub.f32 %v3227_v60, %v4850_v5  ;;  %v726_v28 = vsub.f32 %v3229_v61, %v4848_v6  ;;  %v4847_v30 = vand.u32 4294901760, %v3235_v4  ;;  %v3256_v31 = vsub.f32 %v400_v58, %v530_v7 }
  0x13   :  { %4985 = vst [vmem:[#allocation12_spill] sm:$0xff] %v3242_v10  ;;  %2691 = vmatpush3.bf16.msra.mxu1 %v2690_v9  ;;  %2663 = vmatpush3.bf16.msra.mxu0 %v3242_v10  ;;  %v4844_v32 = vand.u32 4294901760, %v3244_v11  ;;  %v3260_v34 = vpack.c.bf16 %v533_v16, %v530_v7  ;;  %v3262_v38 = vsub.f32 %v401_v63, %v533_v16  ;;  %v482_v39 = vand.u32 4294901760, %v384_v8 }
  0x14   :  { %v720_v40 = vand.u32 4294901760, %v719_v27  ;;  %v727_v41 = vand.u32 4294901760, %v726_v28  ;;  %v607_v42 = vsub.f32 %v3235_v4, %v4847_v30  ;;  %v485_v43 = vand.u32 4294901760, %v385_v17  ;;  %v404_v27 = vld [vmem:[%s4817_s2 + $0xd0] sm:$0xff] }
  0x15   :  { %4986 = vst [vmem:[#allocation13_spill] sm:$0xff] %v3260_v34  ;;  %v614_v44 = vsub.f32 %v3244_v11, %v4844_v32  ;;  %2665 = vmatprep.subr.bf16.mxu0 %v3260_v34  ;;  %v3271_v45 = vsub.f32 %v384_v8, %v482_v39  ;;  %v4842_v48 = vand.u32 4294901760, %v3256_v31  ;;  %v4841_v49 = vand.u32 4294901760, %v3262_v38  ;;  %v285_v34 = vld [vmem:[%s4821_s6] sm:$0xf] }
  0x16   :  { %v2692_v53 = vpack.c.bf16 %v727_v41, %v720_v40  ;;  %v608_v54 = vand.u32 4294901760, %v607_v42  ;;  %v3284_v55 = vpack.c.bf16 %v485_v43, %v482_v39  ;;  %v3286_v56 = vsub.f32 %v385_v17, %v485_v43  ;;  %v405_v42 = vld [vmem:[%s4817_s2 + $0xd8] sm:$0xff] }
  0x17   :  { %v615_v57 = vand.u32 4294901760, %v614_v44  ;;  %v733_v58 = vsub.f32 %v3256_v31, %v4842_v48  ;;  %v740_v62 = vsub.f32 %v3262_v38, %v4841_v49  ;;  %v4840_v63 = vand.u32 4294901760, %v3271_v45 }
  0x18   :  { %4987 = vst [vmem:[#allocation14_spill] sm:$0xff] %v3284_v55  ;;  %2693 = vmatprep.subr.bf16.mxu1 %v2692_v53  ;;  %2667 = vmatpush3.bf16.msra.mxu0 %v3284_v55  ;;  %v4838_v0 = vand.u32 4294901760, %v3286_v56  ;;  %v536_v1 = vand.u32 4294901760, %v402_v50  ;;  %v539_v2 = vand.u32 4294901760, %v403_v51  ;;  %v488_v7 = vand.u32 4294901760, %v386_v52 }
  0x19   :  { %v2694_v8 = vpack.c.bf16 %v615_v57, %v608_v54  ;;  %v734_v9 = vand.u32 4294901760, %v733_v58  ;;  %v741_v16 = vand.u32 4294901760, %v740_v62  ;;  %v621_v17 = vsub.f32 %v3271_v45, %v4840_v63 }
  0x1a   :  { %v628_v28 = vsub.f32 %v3286_v56, %v4838_v0  ;;  %v3309_v39 = vpack.c.bf16 %v539_v2, %v536_v1  ;;  %v3311_v40 = vsub.f32 %v402_v50, %v536_v1  ;;  %v3313_v41 = vsub.f32 %v403_v51, %v539_v2 }
  0x1b   :  { %2695 = vmatpush3.bf16.msra.mxu1 %v2694_v8  ;;  %v2696_v43 = vpack.c.bf16 %v741_v16, %v734_v9  ;;  %v622_v44 = vand.u32 4294901760, %v621_v17  ;;  %v491_v53 = vand.u32 4294901760, %v387_v3  ;;  %v3318_v54 = vsub.f32 %v386_v52, %v488_v7  ;;  %v388_v52 = vld [vmem:[%s4817_s2 + $0x50] sm:$0xff]  ;;  %v389_v9 = vld [vmem:[%s4817_s2 + $0x58] sm:$0xff] }
  0x1c   :  { %4988 = vst [vmem:[#allocation15_spill] sm:$0xff] %v3309_v39  ;;  %v629_v57 = vand.u32 4294901760, %v628_v28  ;;  %2669 = vmatprep.subr.bf16.mxu0 %v3309_v39  ;;  %v4836_v58 = vand.u32 4294901760, %v3311_v40  ;;  %v4835_v50 = vand.u32 4294901760, %v3313_v41  ;;  %v542_v62 = vand.u32 4294901760, %v404_v27 }
  0x1d   :  { %2697 = vmatprep.subr.bf16.mxu1 %v2696_v43  ;;  %v3323_v51 = vpack.c.bf16 %v491_v53, %v488_v7  ;;  %v3325_v1 = vsub.f32 %v387_v3, %v491_v53  ;;  %v4834_v2 = vand.u32 4294901760, %v3318_v54  ;;  %v545_v8 = vand.u32 4294901760, %v405_v42 }
  0x1e   :  { %v2698_v16 = vpack.c.bf16 %v629_v57, %v622_v44  ;;  %v747_v17 = vsub.f32 %v3311_v40, %v4836_v58  ;;  %v754_v3 = vsub.f32 %v3313_v41, %v4835_v50  ;;  %v3340_v7 = vsub.f32 %v404_v27, %v542_v62  ;;  %v406_v27 = vld [vmem:[%s4817_s2 + $0xe0] sm:$0xff] }
  0x1f   :  { %4989 = vst [vmem:[#allocation16_spill] sm:$0xff] %v3323_v51  ;;  %2671 = vmatpush3.bf16.msra.mxu0 %v3323_v51  ;;  %v635_v28 = vsub.f32 %v3318_v54, %v4834_v2  ;;  %v4833_v43 = vand.u32 4294901760, %v3325_v1  ;;  %v3347_v53 = vpack.c.bf16 %v545_v8, %v542_v62  ;;  %v3349_v44 = vsub.f32 %v405_v42, %v545_v8  ;;  %v407_v8 = vld [vmem:[%s4817_s2 + $0xe8] sm:$0xff] }
  0x20   :  { %2699 = vmatpush3.bf16.msra.mxu1 %v2698_v16  ;;  %v748_v57 = vand.u32 4294901760, %v747_v17  ;;  %v755_v33 = vand.u32 4294901760, %v754_v3  ;;  %v494_v29 = vand.u32 4294901760, %v388_v52  ;;  %v497_v26 = vand.u32 4294901760, %v389_v9  ;;  %v390_v16 = vld [vmem:[%s4817_s2 + $0x60] sm:$0xff] }
  0x21   :  { %4990 = vst [vmem:[#allocation17_spill] sm:$0xff] %v3347_v53  ;;  %v636_v24 = vand.u32 4294901760, %v635_v28  ;;  %v642_v23 = vsub.f32 %v3325_v1, %v4833_v43  ;;  %2673 = vmatprep.subr.bf16.mxu0 %v3347_v53  ;;  %v4837_v62 = vand.u32 4294901760, %v3340_v7  ;;  %v4839_v42 = vand.u32 4294901760, %v3349_v44  ;;  %v108_v53 = vld [vmem:[%s4816_s1 + $0x68] sm:$0xff] }
  0x22   :  { %v2700_v17 = vpack.c.bf16 %v755_v33, %v748_v57  ;;  %v3366_v3 = vpack.c.bf16 %v497_v26, %v494_v29  ;;  %v3368_v28 = vsub.f32 %v388_v52, %v494_v29  ;;  %v3370_v22 = vsub.f32 %v389_v9, %v497_v26 }
  0x23   :  { %v643_v43 = vand.u32 4294901760, %v642_v23  ;;  %v761_v2 = vsub.f32 %v3340_v7, %v4837_v62  ;;  %v768_v50 = vsub.f32 %v3349_v44, %v4839_v42  ;;  %v548_v58 = vand.u32 4294901760, %v406_v27  ;;  %v391_v23 = vld [vmem:[%s4817_s2 + $0x68] sm:$0xff] }
  0x24   :  { %4991 = vst [vmem:[#allocation18_spill] sm:$0xff] %v3366_v3  ;;  %2701 = vmatprep.subr.bf16.mxu1 %v2700_v17  ;;  %2675 = vmatpush3.bf16.msra.mxu0 %v3366_v3  ;;  %v4843_v33 = vand.u32 4294901760, %v3368_v28  ;;  %v4845_v29 = vand.u32 4294901760, %v3370_v22  ;;  %v551_v52 = vand.u32 4294901760, %v407_v8  ;;  %v500_v26 = vand.u32 4294901760, %v390_v16  ;;  %v408_v17 = vld [vmem:[%s4817_s2 + $0xf0] sm:$0xff] }
  0x25   :  { %v2702_v9 = vpack.c.bf16 %v643_v43, %v636_v24  ;;  %v762_v57 = vand.u32 4294901760, %v761_v2  ;;  %v769_v62 = vand.u32 4294901760, %v768_v50  ;;  %v3384_v0 = vsub.f32 %v406_v27, %v548_v58  ;;  %v409_v27 = vld [vmem:[%s4817_s2 + $0xf8] sm:$0xff] }
  0x26   :  { %v649_v42 = vsub.f32 %v3368_v28, %v4843_v33  ;;  %v656_v63 = vsub.f32 %v3370_v22, %v4845_v29  ;;  %v3395_v49 = vpack.c.bf16 %v551_v52, %v548_v58  ;;  %v3397_v48 = vsub.f32 %v407_v8, %v551_v52 }
  0x27   :  { %2703 = vmatpush3.bf16.msra.mxu1 %v2702_v9  ;;  %v2704_v24 = vpack.c.bf16 %v769_v62, %v762_v57  ;;  %v503_v50 = vand.u32 4294901760, %v391_v23  ;;  %v3399_v2 = vsub.f32 %v390_v16, %v500_v26  ;;  %v4846_v43 = vand.u32 4294901760, %v3384_v0  ;;  %v392_v62 = vld [vmem:[%s4817_s2 + $0x70] sm:$0xff] }
  0x28   :  { %4992 = vst [vmem:[#allocation19_spill] sm:$0xff] %v3395_v49  ;;  %v650_v33 = vand.u32 4294901760, %v649_v42  ;;  %v657_v32 = vand.u32 4294901760, %v656_v63  ;;  %2677 = vmatprep.subr.bf16.mxu0 %v3395_v49  ;;  %v4849_v58 = vand.u32 4294901760, %v3397_v48  ;;  %v554_v29 = vand.u32 4294901760, %v408_v17  ;;  %v393_v42 = vld [vmem:[%s4817_s2 + $0x78] sm:$0xff] }
  0x29   :  { %4993 = vst [vmem:[#allocation20_spill] sm:$0xff] %v3399_v2  ;;  %2705 = vmatprep.subr.bf16.mxu1 %v2704_v24  ;;  %v3410_v8 = vpack.c.bf16 %v503_v50, %v500_v26  ;;  %v3412_v16 = vsub.f32 %v391_v23, %v503_v50  ;;  %v775_v52 = vsub.f32 %v3384_v0, %v4846_v43  ;;  %v4852_v63 = vand.u32 4294901760, %v3399_v2  ;;  %v104_v49 = vld [vmem:[%s4816_s1 + $0x48] sm:$0xff] }
  0x2a   :  { %v2706_v9 = vpack.c.bf16 %v657_v32, %v650_v33  ;;  %v782_v57 = vsub.f32 %v3397_v48, %v4849_v58  ;;  %v557_v24 = vand.u32 4294901760, %v409_v27  ;;  %v3424_v26 = vsub.f32 %v408_v17, %v554_v29 }
  0x2b   :  { %4994 = vst [vmem:[#allocation21_spill] sm:$0xff] %v3410_v8  ;;  %4995 = vst [vmem:[#allocation22_spill] sm:$0xff] %v3412_v16  ;;  %2679 = vmatpush3.bf16.msra.mxu0 %v3410_v8  ;;  %v776_v23 = vand.u32 4294901760, %v775_v52  ;;  %v663_v50 = vsub.f32 %v3399_v2, %v4852_v63  ;;  %v4853_v43 = vand.u32 4294901760, %v3412_v16  ;;  %v506_v30 = vand.u32 4294901760, %v392_v62  ;;  %v40_v63 = vld [vmem:[%s4815_s0 + $0x8] sm:$0xff] }
  0x2c   :  { %4996 = vst [vmem:[#allocation23_spill] sm:$0xff] %v3424_v26  ;;  %2707 = vmatpush3.bf16.msra.mxu1 %v2706_v9  ;;  %v783_v6 = vand.u32 4294901760, %v782_v57  ;;  %v3431_v32 = vpack.c.bf16 %v557_v24, %v554_v29  ;;  %v3433_v33 = vsub.f32 %v409_v27, %v557_v24  ;;  %v509_v58 = vand.u32 4294901760, %v393_v42  ;;  %v76_v8 = vld [vmem:[%s4815_s0 + $0x128] sm:$0xff] }
  0x2d   :  { %v664_v5 = vand.u32 4294901760, %v663_v50  ;;  %v670_v17 = vsub.f32 %v3412_v16, %v4853_v43  ;;  %v3438_v52 = vsub.f32 %v392_v62, %v506_v30  ;;  %v4854_v47 = vand.u32 4294901760, %v3424_v26  ;;  %v44_v62 = vld [vmem:[%s4815_s0 + $0x28] sm:$0xff] }
  0x2e   :  { %4997 = vst [vmem:[#allocation24_spill] sm:$0xff] %v3431_v32  ;;  %4998 = vst [vmem:[#allocation25_spill] sm:$0xff] %v3433_v33  ;;  %v2708_v9 = vpack.c.bf16 %v783_v6, %v776_v23  ;;  %2681 = vmatprep.subr.bf16.mxu0 %v3431_v32  ;;  %v3445_v29 = vpack.c.bf16 %v509_v58, %v506_v30  ;;  %v3447_v27 = vsub.f32 %v393_v42, %v509_v58  ;;  %v48_v6 = vld [vmem:[%s4815_s0 + $0x48] sm:$0xff]  ;;  %v291_v51 = vlaneseq }
  0x2f   :  { %4999 = vst [vmem:[#allocation26_spill] sm:$0xff] %v3438_v52  ;;  %v4856_v57 = vand.u32 4294901760, %v3433_v33  ;;  %v671_v24 = vand.u32 4294901760, %v670_v17  ;;  %v789_v50 = vsub.f32 %v3424_v26, %v4854_v47  ;;  %v96_v30 = vld [vmem:[%s4816_s1 + $0x8] sm:$0xff]  ;;  %v5002_v42 = vand.u32 4294901760, %v3438_v52 }
  0x30   :  { %5000 = vst [vmem:[#allocation27_spill] sm:$0xff] %v3445_v29  ;;  %5001 = vst [vmem:[#allocation28_spill] sm:$0xff] %v3447_v27  ;;  %2709 = vmatprep.subr.bf16.mxu1 %v2708_v9  ;;  %2683 = vmatpush3.bf16.msra.mxu0 %v3445_v29  ;;  %v52_v23 = vld [vmem:[%s4815_s0 + $0x68] sm:$0xff]  ;;  %v124_v46 = vmul.f32 %v96_v30, %v40_v63  ;;  %v160_v20 = vmul.f32 %v104_v49, %v76_v8 }
  0x31   :  { %v796_v58 = vsub.f32 %v3433_v33, %v4856_v57  ;;  %v68_v17 = vld [vmem:[%s4815_s0 + $0xe8] sm:$0xff]  ;;  %v2710_v57 = vpack.c.bf16 %v671_v24, %v664_v5  ;;  %v790_v43 = vand.u32 4294901760, %v789_v50  ;;  %v677_v29 = vsub.f32 %v3438_v52, %v5002_v42 }
  0x32   :  { %v72_v9 = vld [vmem:[%s4815_s0 + $0x108] sm:$0xff]  ;;  %v5003_v5 = vand.u32 4294901760, %v3447_v27  ;;  %v152_v39 = vmul.f32 %v96_v30, %v68_v17 }
  0x33   :  { %v100_v47 = vld [vmem:[%s4816_s1 + $0x28] sm:$0xff]  ;;  %v797_v63 = vand.u32 4294901760, %v796_v58  ;;  %2711 = vmatpush3.bf16.msra.mxu1 %v2710_v57 }
  0x34   :  { %v64_v32 = vld [vmem:[%s4815_s0 + $0xc8] sm:$0x1]  ;;  %v128_v3 = vmul.f32 %v100_v47, %v44_v62  ;;  %v684_v24 = vsub.f32 %v3447_v27, %v5003_v5  ;;  %v678_v62 = vand.u32 4294901760, %v677_v29  ;;  %v132_v5 = vmul.f32 %v104_v49, %v48_v6 }
  0x35   :  { %v80_v50 = vld [vmem:[%s4815_s0 + $0x148] sm:$0xff]  ;;  %v156_v55 = vmul.f32 %v100_v47, %v72_v9  ;;  %v2712_v10 = vpack.c.bf16 %v797_v63, %v790_v43 }
  0x36   :  { %v92_v42 = vld [vmem:[%s4815_s0 + $0x1a8] sm:$0x1]  ;;  %v685_v59 = vand.u32 4294901760, %v684_v24 }
  0x37   :  { %v120_v58 = vld [vmem:[%s4816_s1 + $0xc8] sm:$0x1] }
  0x38   :  { %16 = vsyncpa [#allocation3], 0  ;;  %v60_v29 = vld [vmem:[%s4815_s0 + $0xa8] sm:$0xff]  ;;  %v136_v57 = vmul.f32 %v108_v53, %v52_v23  ;;  %v148_v6 = vmul.f32 %v120_v58, %v64_v32  ;;  %v164_v30 = vmul.f32 %v108_v53, %v80_v50  ;;  %v193_v17 = vadd.f32 %v128_v3, %v124_v46  ;;  %2713 = vmatprep.subr.bf16.mxu1 %v2712_v10  ;;  %v39_v23 = vld [vmem:[%s4815_s0] sm:$0xff]  ;;  %s3065_s27 = smov [#allocation2]  }
  0x39   :  { %v84_v47 = vld [vmem:[%s4815_s0 + $0x168] sm:$0xff]  ;;  %v2714_v49 = vpack.c.bf16 %v685_v59, %v678_v62  ;;  %v176_v63 = vmul.f32 %v120_v58, %v92_v42  ;;  %v245_v24 = vadd.f32 %v156_v55, %v152_v39  ;;  %v286_v18 = vadd.f32 1e-05, %v285_v34  ;;  %v43_v10 = vld [vmem:[%s4815_s0 + $0x20] sm:$0xff]  ;;  %s2222_s28 = sshll.u32 %s3065_s27, 4  ;;  %s2223_s28 = int_to_ptr.vmem [resolvable:$true] %s2222_s28 }
  0x3a   :  { %v112_v43 = vld [vmem:[%s4816_s1 + $0x88] sm:$0xff]  ;;  %v194_v53 = vadd.f32 %v193_v17, %v132_v5  ;;  %v3531_v46 = vshrl.u32 %v291_v51, 7  ;;  %v2716_v59 = vpack.c.bf16 %v3150_v15, %v3148_v14  ;;  %v47_v55 = vld [vmem:[%s4815_s0 + $0x40] sm:$0xff]  ;;  %v198_v5 = vsel %vm184_vm0, %v148_v6, 0.0  ;;  %p3046_p1 = scmp.lt.s32.totalorder %s2223_s28, %s2223_s28 }
  0x3b   :  { %v88_v8 = vld [vmem:[%s4815_s0 + $0x188] sm:$0xff]  ;;  %v140_v32 = vmul.f32 %v112_v43, %v56_v35  ;;  %v51_v34 = vld [vmem:[%s4815_s0 + $0x60] sm:$0xff]  ;;  %2715 = vmatpush3.bf16.msra.mxu1 %v2714_v49  ;;  %v168_v35 = vmul.f32 %v112_v43, %v84_v47  ;;  %v246_v39 = vadd.f32 %v245_v24, %v160_v20  ;;  %3037 = vrsqrt.f32 %v286_v18 }
  0x3c   :  { %v116_v9 = vld [vmem:[%s4816_s1 + $0xa8] sm:$0xff]  ;;  %5004 = vst [vmem:[#allocation29_spill] sm:$0xff] %v3531_v46  ;;  %v67_v51 = vld [vmem:[%s4815_s0 + $0xe0] sm:$0xff]  ;;  %v195_v58 = vadd.f32 %v194_v53, %v136_v57  ;;  %2717 = vmatprep.subr.bf16.mxu0 %v2716_v59  ;;  %2749 = vmatprep.subr.bf16.mxu1 %v3144_v12  ;;  %v250_v43 = vsel %vm184_vm0, %v176_v63, 0.0  ;;  %v3580_v63 = vsub.s32 1, %v3531_v46  ;;  %vm451_vm1 = vcmask 1041409  }
  0x3d   :  { %v71_v3 = vld [vmem:[%s4815_s0 + $0x100] sm:$0xff]  ;;  %v144_v42 = vmul.f32 %v116_v9, %v60_v29  ;;  %v172_v62 = vmul.f32 %v116_v9, %v88_v8  ;;  %v247_v29 = vadd.f32 %v246_v39, %v164_v30 }
  0x3e   :  { %v95_v50 = vld [vmem:[%s4816_s1] sm:$0xff]  ;;  %v196_v9 = vadd.f32 %v195_v58, %v140_v32 }
  0x3f   :  { %v75_v18 = vld [vmem:[%s4815_s0 + $0x120] sm:$0xff]  ;;  %v123_v30 = vmul.f32 %v95_v50, %v39_v23  ;;  %v151_v12 = vmul.f32 %v95_v50, %v67_v51  ;;  %v248_v23 = vadd.f32 %v247_v29, %v168_v35 }
  0x40   :  { %v99_v20 = vld [vmem:[%s4816_s1 + $0x20] sm:$0xff]  ;;  %v197_v27 = vadd.f32 %v196_v9, %v144_v42 }
  0x41   :  { %v103_v47 = vld [vmem:[%s4816_s1 + $0x40] sm:$0xff]  ;;  %v127_v8 = vmul.f32 %v99_v20, %v43_v10  ;;  %v155_v14 = vmul.f32 %v99_v20, %v71_v3  ;;  %v249_v35 = vadd.f32 %v248_v23, %v172_v62 }
  0x42   :  { %v3568_v57 = vld [vmem:[%s4820_s5] sm:$0xf]  ;;  %v131_v39 = vmul.f32 %v103_v47, %v47_v55  ;;  %v159_v46 = vmul.f32 %v103_v47, %v75_v18  ;;  %v199_v2 = vadd.f32 %v198_v5, %v197_v27 }
  0x43   :  { %5005 = vst [vmem:[#allocation30_spill] sm:$0xff] %v3568_v57  ;;  %v55_v6 = vld [vmem:[%s4815_s0 + $0x80] sm:$0xff]  ;;  %v179_v26 = vadd.f32 %v127_v8, %v123_v30  ;;  %v232_v16 = vadd.f32 %v155_v14, %v151_v12  ;;  %v251_v62 = vadd.f32 %v250_v43, %v249_v35 }
  0x44   :  { %v59_v17 = vld [vmem:[%s4815_s0 + $0xa0] sm:$0xff] }
  0x45   :  { %v63_v49 = vld [vmem:[%s4815_s0 + $0xc0] sm:$0x1]  ;;  %v180_v18 = vadd.f32 %v179_v26, %v131_v39  ;;  %v233_v20 = vadd.f32 %v232_v16, %v159_v46  ;;  %v3038_v14 = vpop.eup %3037  ;;  %v252_v27 = vrot.slane %v251_v62, 4  ;;  %v5044_v16 = vand.u32 4294901760, %v3397_v48 }
  0x46   :  { %v79_v24 = vld [vmem:[%s4815_s0 + $0x140] sm:$0xff] }
  0x47   :  { %v83_v53 = vld [vmem:[%s4815_s0 + $0x160] sm:$0xff] }
  0x48   :  { %v107_v59 = vld [vmem:[%s4816_s1 + $0x60] sm:$0xff] }
  0x49   :  { %v111_v32 = vld [vmem:[%s4816_s1 + $0x80] sm:$0xff]  ;;  %v135_v15 = vmul.f32 %v107_v59, %v51_v34  ;;  %v163_v33 = vmul.f32 %v107_v59, %v79_v24  ;;  %v3608_v34 = vrot.slane %v3568_v57, %v3580_v63  ;;  %v253_v24 = vadd.f32 %v252_v27, %v251_v62  ;;  %v5010_v27 = vld [vmem:[#allocation23_spill] sm:$0xff] }
  0x4a   :  { %v115_v10 = vld [vmem:[%s4816_s1 + $0xa0] sm:$0xff]  ;;  %v139_v52 = vmul.f32 %v111_v32, %v55_v6  ;;  %v167_v3 = vmul.f32 %v111_v32, %v83_v53  ;;  %v200_v6 = vrot.slane %v199_v2, 4 }
  0x4b   :  { %v119_v58 = vld [vmem:[%s4816_s1 + $0xc0] sm:$0x1]  ;;  %v143_v55 = vmul.f32 %v115_v10, %v59_v17  ;;  %v181_v30 = vadd.f32 %v180_v18, %v135_v15  ;;  %v234_v8 = vadd.f32 %v233_v20, %v163_v33  ;;  %v254_v32 = vrot.slane %v253_v24, 2 }
  0x4c   :  { %v147_v51 = vmul.f32 %v119_v58, %v63_v49  ;;  %v87_v50 = vld [vmem:[%s4815_s0 + $0x180] sm:$0xff]  ;;  %v201_v26 = vadd.f32 %v200_v6, %v199_v2 }
  0x4d   :  { %v91_v29 = vld [vmem:[%s4815_s0 + $0x1a0] sm:$0x1]  ;;  %v171_v17 = vmul.f32 %v115_v10, %v87_v50  ;;  %v182_v53 = vadd.f32 %v181_v30, %v139_v52  ;;  %v235_v59 = vadd.f32 %v234_v8, %v167_v3  ;;  %v255_v62 = vadd.f32 %v254_v32, %v253_v24  ;;  %v5012_v8 = vld [vmem:[#allocation26_spill] sm:$0xff]  ;;  %v5014_v3 = vld [vmem:[#allocation29_spill] sm:$0xff] }
  0x4e   :  { %v175_v49 = vmul.f32 %v119_v58, %v91_v29  ;;  %v284_v5 = vld [vmem:[%s4818_s3] sm:$0xf]  ;;  %v185_v46 = vsel %vm184_vm0, %v147_v51, 0.0  ;;  %v202_v15 = vrot.slane %v201_v26, 2  ;;  %v3655_v24 = vsub.s32 0, %v5014_v3 }
  0x4f   :  { %v3628_v33 = vmul.f32 %v3038_v14, %v284_v5  ;;  %v3636_v10 = vld [vmem:[%s4819_s4] sm:$0xf]  ;;  %v183_v58 = vadd.f32 %v182_v53, %v143_v55  ;;  %v236_v52 = vadd.f32 %v235_v59, %v171_v17  ;;  %v256_v59 = vrot.slane %v255_v62, 1 }
  0x50   :  { %v237_v23 = vsel %vm184_vm0, %v175_v49, 0.0  ;;  %5007 = vst [vmem:[#allocation32_spill] sm:$0xff] %v3636_v10  ;;  %v203_v35 = vadd.f32 %v202_v15, %v201_v26  ;;  %v5008_v6 = vld [vmem:[#allocation20_spill] sm:$0xff]  ;;  %v5009_v49 = vld [vmem:[#allocation22_spill] sm:$0xff]  ;;  %v357_v14 = vrot.slane %v3636_v10, %v3580_v63  ;;  %v5011_v5 = vld [vmem:[#allocation25_spill] sm:$0xff]  ;;  %v5016_v32 = vand.u32 4294901760, %v3191_v36 }
  0x51   :  { %5006 = vst [vmem:[#allocation31_spill] sm:$0xff] %v3628_v33  ;;  %v186_v18 = vadd.f32 %v185_v46, %v183_v58  ;;  %v238_v20 = vadd.f32 %v237_v23, %v236_v52  ;;  %v5013_v26 = vld [vmem:[#allocation28_spill] sm:$0xff]  ;;  %5015 = vst [vmem:[#allocation20_spill] sm:$0xff] %v3655_v24  ;;  %v327_v23 = vrot.slane %v3628_v33, %v3580_v63  ;;  %v5017_v58 = vand.u32 4294901760, %v3193_v37 }
  0x52   :  { %v204_v17 = vrot.slane %v203_v35, 1  ;;  %v5019_v30 = vand.u32 4294901760, %v3227_v60  ;;  %v5020_v53 = vand.u32 4294901760, %v3229_v61  ;;  %v257_v50 = vadd.f32 %v256_v59, %v255_v62 }
  0x53   :  { %v187_v15 = vrot.slane %v186_v18, 4  ;;  %v239_v29 = vrot.slane %v238_v20, 4  ;;  %v3663_v52 = vpack.c.bf16 %v5017_v58, %v5016_v32  ;;  %v5025_v32 = vand.u32 4294901760, %v3256_v31 }
  0x54   :  { %v205_v46 = vadd.f32 %v204_v17, %v203_v35  ;;  %v3669_v55 = vpack.c.bf16 %v5020_v53, %v5019_v30  ;;  %v5022_v35 = vand.u32 4294901760, %v3235_v4  ;;  %v5023_v17 = vand.u32 4294901760, %v3244_v11 }
  0x55   :  { %5018 = vst [vmem:[#allocation22_spill] sm:$0xff] %v3663_v52  ;;  %v188_v51 = vadd.f32 %v187_v15, %v186_v18  ;;  %v240_v2 = vadd.f32 %v239_v29, %v238_v20  ;;  %v5026_v58 = vand.u32 4294901760, %v3262_v38  ;;  %v5028_v30 = vand.u32 4294901760, %v3271_v45 }
  0x56   :  { %5021 = vst [vmem:[#allocation23_spill] sm:$0xff] %v3669_v55  ;;  %v3675_v63 = vpack.c.bf16 %v5023_v17, %v5022_v35  ;;  %v312_v39 = vsub.f32 %v205_v46, %v3608_v34  ;;  %v5029_v62 = vand.u32 4294901760, %v3286_v56  ;;  %v5031_v29 = vand.u32 4294901760, %v3311_v40 }
  0x57   :  { %v3682_v9 = vpack.c.bf16 %v5026_v58, %v5025_v32  ;;  %v5032_v20 = vand.u32 4294901760, %v3313_v41  ;;  %v316_v59 = vsub.f32 %v257_v50, %v3608_v34  ;;  %v189_v15 = vrot.slane %v188_v51, 2 }
  0x58   :  { %5024 = vst [vmem:[#allocation25_spill] sm:$0xff] %v3675_v63  ;;  %v3688_v18 = vpack.c.bf16 %v5029_v62, %v5028_v30  ;;  %v241_v46 = vrot.slane %v240_v2, 2  ;;  %v5034_v35 = vand.u32 4294901760, %v3318_v54  ;;  %v5035_v17 = vand.u32 4294901760, %v3325_v1  ;;  %v5072_v63 = vld [vmem:[#allocation7_spill] sm:$0xff] }
  0x59   :  { %5027 = vst [vmem:[#allocation26_spill] sm:$0xff] %v3682_v9  ;;  %v3694_v53 = vpack.c.bf16 %v5032_v20, %v5031_v29  ;;  %v341_v58 = vmul.f32 %v327_v23, %v312_v39  ;;  %v5037_v30 = vand.u32 4294901760, %v3340_v7  ;;  %v5038_v62 = vand.u32 4294901760, %v3349_v44 }
  0x5a   :  { %5030 = vst [vmem:[#allocation28_spill] sm:$0xff] %v3688_v18  ;;  %v3701_v32 = vpack.c.bf16 %v5035_v17, %v5034_v35  ;;  %v5040_v29 = vand.u32 4294901760, %v3368_v28  ;;  %v5041_v20 = vand.u32 4294901760, %v3370_v22  ;;  %v5043_v50 = vand.u32 4294901760, %v3384_v0 }
  0x5b   :  { %5033 = vst [vmem:[#allocation33_spill] sm:$0xff] %v3694_v53  ;;  %v3707_v43 = vpack.c.bf16 %v5038_v62, %v5037_v30  ;;  %v345_v35 = vmul.f32 %v327_v23, %v316_v59  ;;  %v190_v39 = vadd.f32 %v189_v15, %v188_v51  ;;  %v242_v17 = vadd.f32 %v241_v46, %v240_v2 }
  0x5c   :  { %5036 = vst [vmem:[#allocation34_spill] sm:$0xff] %v3701_v32  ;;  %v3713_v34 = vpack.c.bf16 %v5041_v20, %v5040_v29  ;;  %v3719_v12 = vpack.c.bf16 %v5044_v16, %v5043_v50  ;;  %v5046_v47 = vand.u32 4294901760, %v5008_v6  ;;  %v5047_v30 = vand.u32 4294901760, %v5009_v49 }
  0x5d   :  { %5039 = vst [vmem:[#allocation35_spill] sm:$0xff] %v3707_v43  ;;  %v294_v42 = vrot.slane %v3568_v57, %v3655_v24  ;;  %v5049_v29 = vand.u32 4294901760, %v5010_v27  ;;  %v5050_v20 = vand.u32 4294901760, %v5011_v5  ;;  %v5052_v16 = vand.u32 4294901760, %v5012_v8  ;;  %v5063_v43 = vld [vmem:[#allocation11_spill] sm:$0xff] }
  0x5e   :  { %5042 = vst [vmem:[#allocation36_spill] sm:$0xff] %v3713_v34  ;;  %5045 = vst [vmem:[#allocation37_spill] sm:$0xff] %v3719_v12  ;;  %v3725_v62 = vpack.c.bf16 %v5047_v30, %v5046_v47  ;;  %v5053_v51 = vand.u32 4294901760, %v5013_v26  ;;  %v371_v23 = vadd.f32 %v357_v14, %v341_v58  ;;  %v375_v59 = vadd.f32 %v357_v14, %v345_v35  ;;  %v3751_v14 = vld [vmem:[%s4817_s2 + $0x180] sm:$0xff]  ;;  %v3756_v58 = vld [vmem:[%s4817_s2 + $0x188] sm:$0xff] }
  0x5f   :  { %v3733_v34 = vpack.c.bf16 %v5050_v20, %v5049_v29  ;;  %v191_v15 = vrot.slane %v190_v39, 1  ;;  %v243_v47 = vrot.slane %v242_v17, 1  ;;  %v353_v12 = vrot.slane %v3636_v10, %v3655_v24  ;;  %v413_v10 = vld [vmem:[%s4817_s2 + $0x118] sm:$0xff] }
  0x60   :  { %5048 = vst [vmem:[#allocation38_spill] sm:$0xff] %v3725_v62  ;;  %v3739_v2 = vpack.c.bf16 %v5053_v51, %v5052_v16  ;;  %v453_v46 = vrot.slane %v375_v59, 7  ;;  %v323_v62 = vrot.slane %v3628_v33, %v3655_v24  ;;  %v1377_v59 = vand.u32 4294901760, %v3756_v58  ;;  %v429_v33 = vld [vmem:[%s4817_s2 + $0x198] sm:$0xff] }
  0x61   :  { %5051 = vst [vmem:[#allocation39_spill] sm:$0xff] %v3733_v34  ;;  %v192_v50 = vadd.f32 %v191_v15, %v190_v39  ;;  %v244_v30 = vadd.f32 %v243_v47, %v242_v17  ;;  %v410_v15 = vld [vmem:[%s4817_s2 + $0x100] sm:$0xff]  ;;  %v5073_v55 = vand.u32 4294901760, %v5072_v63  ;;  %v5076_v52 = vand.u32 4294901760, %v3164_v21  ;;  %v3878_v63 = vld [vmem:[%s4817_s2 + $0x1b0] sm:$0xff] }
  0x62   :  { %5054 = vst [vmem:[#allocation40_spill] sm:$0xff] %v3739_v2  ;;  %v454_v29 = vsel %vm451_vm1, %v453_v46, %v371_v23  ;;  %v1374_v23 = vand.u32 4294901760, %v3751_v14  ;;  %v411_v46 = vld [vmem:[%s4817_s2 + $0x108] sm:$0xff]  ;;  %v5059_v2 = vld [vmem:[#allocation8_spill] sm:$0xff] }
  0x63   :  { %v311_v20 = vsub.f32 %v192_v50, %v294_v42  ;;  %v315_v34 = vsub.f32 %v244_v30, %v294_v42  ;;  %v3746_v16 = vand.u32 4294901760, %v454_v29  ;;  %v1326_v50 = vand.u32 4294901760, %v410_v15 }
  0x65   :  { %v340_v35 = vmul.f32 %v323_v62, %v311_v20  ;;  %v344_v39 = vmul.f32 %v323_v62, %v315_v34  ;;  %v560_v17 = vsub.f32 %v454_v29, %v3746_v16  ;;  %800 = vmatprep.mubr.f32.mxu1 %v3746_v16  ;;  %v3773_v29 = vsub.f32 %v3756_v58, %v1377_v59 }
  0x66   :  { %v1329_v20 = vand.u32 4294901760, %v411_v46 }
  0x67   :  { %v370_v42 = vadd.f32 %v353_v12, %v340_v35  ;;  %v374_v51 = vadd.f32 %v353_v12, %v344_v39  ;;  %v561_v47 = vand.u32 4294901760, %v560_v17  ;;  %v3770_v12 = vsub.f32 %v3751_v14, %v1374_v23  ;;  %5056 = vst [vmem:[#allocation42_spill] sm:$0xff] %v3773_v29 }
  0x68   :  { %v3784_v14 = vsub.f32 %v411_v46, %v1329_v20  ;;  %v5062_v46 = vld [vmem:[#allocation10_spill] sm:$0xff] }
  0x69   :  { %v450_v34 = vrot.slane %v374_v51, 7  ;;  %v562_v62 = vsub.f32 %v560_v17, %v561_v47  ;;  %5055 = vst [vmem:[#allocation41_spill] sm:$0xff] %v3770_v12  ;;  %v3781_v51 = vsub.f32 %v410_v15, %v1326_v50  ;;  %v4914_v58 = vand.u32 4294901760, %v3770_v12 }
  0x6a   :  { %5060 = vst [vmem:[#allocation8_spill] sm:$0xff] %v3784_v14  ;;  %v5067_v53 = vand.u32 4294901760, %v3784_v14 }
  0x6b   :  { %v452_v30 = vsel %vm451_vm1, %v450_v34, %v370_v42  ;;  %v563_v35 = vand.u32 4294901760, %v562_v62  ;;  %5058 = vst [vmem:[#allocation44_spill] sm:$0xff] %v3781_v51  ;;  %v4917_v42 = vand.u32 4294901760, %v3773_v29  ;;  %v5061_v62 = vld [vmem:[#allocation9_spill] sm:$0xff] }
  0x6c   :  { %v3775_v39 = vand.u32 4294901760, %v452_v30 }
  0x6d   :  { %564 = vmatprep.mubr.f32.mxu0 %v563_v35  ;;  %v1553_v35 = vsub.f32 %v3770_v12, %v4914_v58  ;;  %v5064_v58 = vand.u32 4294901760, %v3781_v51 }
  0x6e   :  { %5057 = vst [vmem:[#allocation43_spill] sm:$0xff] %v3775_v39  ;;  %v3778_v24 = vsub.f32 %v452_v30, %v3775_v39  ;;  %802 = vmatmul.mubr.f32.vlgmr.msra.gmra.mrb[0].mxu1 %v3775_v39  ;;  %v428_v30 = vld [vmem:[%s4817_s2 + $0x190] sm:$0xff]  ;;  %v1560_v39 = vsub.f32 %v3773_v29, %v4917_v42  ;;  %v1383_v42 = vand.u32 4294901760, %v429_v33  ;;  %v5065_v29 = vpack.c.bf16 %v3160_v19, %v3146_v13 }
  0x6f   :  { %2751 = vmatpush3.bf16.msra.mxu1 %v5059_v2  ;;  %1044 = vmatprep.mubr.f32.mxu1 %v561_v47  ;;  %v1380_v57 = vand.u32 4294901760, %v428_v30  ;;  %v412_v47 = vld [vmem:[%s4817_s2 + $0x110] sm:$0xff]  ;;  %v1441_v12 = vsub.f32 %v3781_v51, %v5064_v58  ;;  %v1554_v3 = vand.u32 4294901760, %v1553_v35  ;;  %v5068_v58 = vpack.c.bf16 %v3170_v25, %v3164_v21  ;;  %v5069_v51 = vld [vmem:[#allocation13_spill] sm:$0xff] }
  0x70   :  { %v4913_v34 = vand.u32 4294901760, %v3778_v24  ;;  %2753 = vmatprep.subr.bf16.mxu1 %v5061_v62  ;;  %v1561_v32 = vand.u32 4294901760, %v1560_v39  ;;  %v1332_v9 = vand.u32 4294901760, %v412_v47  ;;  %v5070_v39 = vld [vmem:[#allocation6_spill] sm:$0xff]  ;;  %v3869_v21 = vpack.c.bf16 %v1377_v59, %v1374_v23 }
  0x71   :  { %v3825_v18 = vsub.f32 %v428_v30, %v1380_v57  ;;  %v5071_v35 = vand.u32 4294901760, %v5070_v39  ;;  %v5074_v30 = vand.u32 4294901760, %v3146_v13  ;;  %v3862_v13 = vld [vmem:[%s4817_s2 + $0x120] sm:$0xff]  ;;  %v3888_v23 = vld [vmem:[%s4817_s2 + $0x130] sm:$0xff]  ;;  %v5082_v59 = vpack.c.bf16 %v3193_v37, %v3191_v36  ;;  %v3902_v39 = vld [vmem:[%s4817_s2 + $0x138] sm:$0xff] }
  0x72   :  { %v568_v15 = vsub.f32 %v3778_v24, %v4913_v34  ;;  %5078 = vst [vmem:[#allocation9_spill] sm:$0xff] %v3869_v21  ;;  %5081 = vst [vmem:[#allocation7_spill] sm:$0xff] %v3888_v23  ;;  %v3912_v36 = vld [vmem:[%s4817_s2 + $0x1c8] sm:$0xff]  ;;  %v5087_v37 = vpack.c.bf16 %v3229_v61, %v3227_v60  ;;  %v5115_v21 = vpack.c.bf16 %v3286_v56, %v3271_v45 }
  0x73   :  { %2755 = vmatpush3.bf16.msra.mxu1 %v5062_v46  ;;  %5086 = vst [vmem:[#allocation46_spill] sm:$0xff] %v3912_v36 }
  0x74   :  { %v569_v34 = vand.u32 4294901760, %v568_v15  ;;  %2757 = vmatprep.subr.bf16.mxu1 %v5063_v43  ;;  %v5066_v15 = vld [vmem:[#allocation12_spill] sm:$0xff]  ;;  %v1335_v43 = vand.u32 4294901760, %v413_v10 }
  0x76   :  { %570 = vmatmul.mubr.f32.vlgmr.msra.gmra.mrb[0].mxu0 %v569_v34  ;;  %v1448_v34 = vsub.f32 %v3784_v14, %v5067_v53  ;;  %v3840_v53 = vpack.c.bf16 %v5073_v55, %v5071_v35  ;;  %v5075_v14 = vand.u32 4294901760, %v3160_v19  ;;  %v3867_v19 = vld [vmem:[%s4817_s2 + $0x128] sm:$0xff]  ;;  %v1442_v55 = vand.u32 4294901760, %v1441_v12  ;;  %v3907_v35 = vld [vmem:[%s4817_s2 + $0x1c0] sm:$0xff] }
  0x77   :  { %2719 = vmatpush3.bf16.msra.mxu0 %v5065_v29  ;;  %2759 = vmatpush3.bf16.msra.mxu1 %v5066_v15  ;;  %v3834_v29 = vld [vmem:[%s4817_s2 + $0x1a0] sm:$0xff]  ;;  %5085 = vst [vmem:[#allocation45_spill] sm:$0xff] %v3907_v35  ;;  %v5111_v61 = vand.u32 4294901760, %v3907_v35 }
  0x78   :  { %2721 = vmatprep.subr.bf16.mxu0 %v5068_v58  ;;  %2761 = vmatprep.subr.bf16.mxu1 %v5069_v51  ;;  %v3846_v58 = vpack.c.bf16 %v5075_v14, %v5074_v30  ;;  %v5077_v51 = vand.u32 4294901760, %v3170_v25  ;;  %v3871_v25 = vpack.c.bf16 %v1329_v20, %v1326_v50  ;;  %v3894_v50 = vpack.c.bf16 %v1561_v32, %v1554_v3 }
  0x79   :  { %937 = vmatprep.mubr.f32.mxu0 %v560_v17  ;;  %v3857_v17 = vld [vmem:[%s4817_s2 + $0x1a8] sm:$0xff]  ;;  %v1449_v12 = vand.u32 4294901760, %v1448_v34  ;;  %v3896_v20 = vsub.f32 %v429_v33, %v1383_v42  ;;  %v5088_v33 = vld [vmem:[#allocation15_spill] sm:$0xff]  ;;  %v3918_v3 = vsub.f32 %v412_v47, %v1332_v9  ;;  %v1386_v32 = vand.u32 4294901760, %v3834_v29 }
  0x7a   :  { %v3852_v15 = vpack.c.bf16 %v5077_v51, %v5076_v52  ;;  %5079 = vst [vmem:[#allocation10_spill] sm:$0xff] %v3871_v25  ;;  %v3873_v52 = vpack.c.bf16 %v1383_v42, %v1380_v57  ;;  %v3883_v51 = vld [vmem:[%s4817_s2 + $0x1b8] sm:$0xff]  ;;  %v5083_v57 = vld [vmem:[#allocation14_spill] sm:$0xff]  ;;  %v1389_v42 = vand.u32 4294901760, %v3857_v17  ;;  %v3923_v30 = vsub.f32 %v413_v10, %v1335_v43  ;;  %v5096_v47 = vld [vmem:[#allocation17_spill] sm:$0xff] }
  0x7b   :  { %2723 = vmatpush3.bf16.msra.mxu0 %v5082_v59  ;;  %2763 = vmatpush3.bf16.msra.mxu1 %v5083_v57  ;;  %5084 = vst [vmem:[#allocation14_spill] sm:$0xff] %v3902_v39  ;;  %v4926_v14 = vand.u32 4294901760, %v3878_v63  ;;  %v5090_v25 = vpack.c.bf16 %v3244_v11, %v3235_v4  ;;  %v5091_v10 = vld [vmem:[#allocation16_spill] sm:$0xff]  ;;  %v3936_v34 = vpack.c.bf16 %v1449_v12, %v1442_v55  ;;  %v5105_v12 = vand.u32 4294901760, %v3883_v51 }
  0x7c   :  { %5080 = vst [vmem:[#allocation6_spill] sm:$0xff] %v3873_v52  ;;  %2725 = vmatprep.subr.bf16.mxu0 %v5087_v37  ;;  %2765 = vmatprep.subr.bf16.mxu1 %v5088_v33  ;;  %5089 = vst [vmem:[#allocation15_spill] sm:$0xff] %v3923_v30  ;;  %v3938_v59 = vpack.c.bf16 %v1335_v43, %v1332_v9  ;;  %v5094_v52 = vand.u32 4294901760, %v3825_v18  ;;  %v5095_v37 = vpack.c.bf16 %v3262_v38, %v3256_v31  ;;  %v3965_v31 = vld [vmem:[%s4817_s2 + $0x140] sm:$0xff]  ;;  %v3970_v38 = vld [vmem:[%s4817_s2 + $0x148] sm:$0xff] }
  0x7d   :  { %5092 = vst [vmem:[#allocation16_spill] sm:$0xff] %v3936_v34  ;;  %v3952_v11 = vsub.f32 %v3834_v29, %v1386_v32  ;;  %v3955_v43 = vsub.f32 %v3857_v17, %v1389_v42  ;;  %v5098_v9 = vand.u32 4294901760, %v3862_v13  ;;  %5100 = vst [vmem:[#allocation49_spill] sm:$0xff] %v3965_v31  ;;  %v5102_v17 = vand.u32 4294901760, %v3867_v19 }
  0x7e   :  { %5093 = vst [vmem:[#allocation47_spill] sm:$0xff] %v3938_v59  ;;  %v3943_v60 = vsub.f32 %v3825_v18, %v5094_v52  ;;  %5101 = vst [vmem:[#allocation50_spill] sm:$0xff] %v3970_v38  ;;  %v3981_v52 = vsub.f32 %v3878_v63, %v4926_v14  ;;  %v5109_v29 = vand.u32 4294901760, %v3902_v39  ;;  %v4001_v14 = vsub.f32 %v3907_v35, %v5111_v61 }
  0x7f   :  { %2727 = vmatpush3.bf16.msra.mxu0 %v5090_v25  ;;  %2767 = vmatpush3.bf16.msra.mxu1 %v5091_v10  ;;  %5097 = vst [vmem:[#allocation17_spill] sm:$0xff] %v3955_v43  ;;  %v3960_v25 = vsub.f32 %v3862_v13, %v5098_v9  ;;  %v3976_v55 = vsub.f32 %v3867_v19, %v5102_v17  ;;  %v5107_v9 = vand.u32 4294901760, %v3888_v23  ;;  %v5113_v59 = vand.u32 4294901760, %v3912_v36 }
  0x80   :  { %2729 = vmatprep.subr.bf16.mxu0 %v5095_v37  ;;  %2769 = vmatprep.subr.bf16.mxu1 %v5096_v47  ;;  %5104 = vst [vmem:[#allocation52_spill] sm:$0xff] %v3981_v52  ;;  %v3986_v37 = vsub.f32 %v3883_v51, %v5105_v12  ;;  %v3996_v17 = vsub.f32 %v3902_v39, %v5109_v29  ;;  %5112 = vst [vmem:[#allocation56_spill] sm:$0xff] %v4001_v14  ;;  %v5117_v29 = vand.u32 4294901760, %v3896_v20 }
  0x81   :  { %5099 = vst [vmem:[#allocation48_spill] sm:$0xff] %v3960_v25  ;;  %5103 = vst [vmem:[#allocation51_spill] sm:$0xff] %v3976_v55  ;;  %v3991_v4 = vsub.f32 %v3888_v23, %v5107_v9  ;;  %v4006_v12 = vsub.f32 %v3912_v36, %v5113_v59  ;;  %v5116_v9 = vld [vmem:[#allocation18_spill] sm:$0xff]  ;;  %v5118_v59 = vpack.c.bf16 %v3313_v41, %v3311_v40  ;;  %v5119_v36 = vld [vmem:[#allocation19_spill] sm:$0xff]  ;;  %v5120_v45 = vand.u32 4294901760, %v3918_v3 }
  0x82   :  { %5106 = vst [vmem:[#allocation53_spill] sm:$0xff] %v3986_v37  ;;  %5110 = vst [vmem:[#allocation55_spill] sm:$0xff] %v3996_v17  ;;  %v4016_v39 = vsub.f32 %v3896_v20, %v5117_v29  ;;  %v5121_v61 = vand.u32 4294901760, %v3923_v30  ;;  %v5123_v40 = vpack.c.bf16 %v3325_v1, %v3318_v54  ;;  %v5124_v41 = vld [vmem:[#allocation21_spill] sm:$0xff]  ;;  %v4054_v34 = vpack.c.bf16 %v1389_v42, %v1386_v32  ;;  %v5129_v1 = vld [vmem:[#allocation24_spill] sm:$0xff] }
  0x83   :  { %5108 = vst [vmem:[#allocation54_spill] sm:$0xff] %v3991_v4  ;;  %5114 = vst [vmem:[#allocation57_spill] sm:$0xff] %v4006_v12  ;;  %2731 = vmatpush3.bf16.msra.mxu0 %v5115_v21  ;;  %2771 = vmatpush3.bf16.msra.mxu1 %v5116_v9  ;;  %v4027_v56 = vsub.f32 %v3918_v3, %v5120_v45  ;;  %v4043_v45 = vld [vmem:[%s4817_s2 + $0x1d0] sm:$0xff]  ;;  %v5127_v23 = vand.u32 4294901760, %v3970_v38  ;;  %v5128_v54 = vpack.c.bf16 %v3349_v44, %v3340_v7 }
  0x84   :  { %2733 = vmatprep.subr.bf16.mxu0 %v5118_v59  ;;  %2773 = vmatprep.subr.bf16.mxu1 %v5119_v36  ;;  %v4035_v35 = vsub.f32 %v3923_v30, %v5121_v61  ;;  %5122 = vst [vmem:[#allocation18_spill] sm:$0xff] %v4043_v45  ;;  %v1575_v59 = vand.u32 4294901760, %v4016_v39  ;;  %5125 = vst [vmem:[#allocation19_spill] sm:$0xff] %v4054_v34  ;;  %v5126_v30 = vand.u32 4294901760, %v3965_v31  ;;  %v5130_v39 = vand.u32 4294901760, %v3952_v11 }
  0x85   :  { %v4064_v21 = vsub.f32 %v3970_v38, %v5127_v23  ;;  %v5131_v42 = vand.u32 4294901760, %v3955_v43  ;;  %v4082_v23 = vld [vmem:[%s4817_s2 + $0x1d8] sm:$0xff]  ;;  %v1456_v44 = vand.u32 4294901760, %v4027_v56  ;;  %v5135_v38 = vand.u32 4294901760, %v3981_v52 }
  0x86   :  { %v4059_v29 = vsub.f32 %v3965_v31, %v5126_v30  ;;  %v1581_v32 = vsub.f32 %v3952_v11, %v5130_v39  ;;  %5133 = vst [vmem:[#allocation21_spill] sm:$0xff] %v4082_v23  ;;  %v5136_v31 = vand.u32 4294901760, %v3986_v37  ;;  %v5137_v34 = vand.u32 4294901760, %v3991_v4 }
  0x87   :  { %2735 = vmatpush3.bf16.msra.mxu0 %v5123_v40  ;;  %2775 = vmatpush3.bf16.msra.mxu1 %v5124_v41  ;;  %v1588_v30 = vsub.f32 %v3955_v43, %v5131_v42  ;;  %v5132_v40 = vand.u32 4294901760, %v3960_v25  ;;  %v1595_v42 = vsub.f32 %v3981_v52, %v5135_v38  ;;  %v5138_v7 = vand.u32 4294901760, %v3996_v17 }
  0x88   :  { %2737 = vmatprep.subr.bf16.mxu0 %v5128_v54  ;;  %2777 = vmatprep.subr.bf16.mxu1 %v5129_v1  ;;  %v5134_v54 = vand.u32 4294901760, %v3976_v55  ;;  %v5139_v43 = vand.u32 4294901760, %v4001_v14 }
  0x89   :  { %v1469_v61 = vsub.f32 %v3960_v25, %v5132_v40  ;;  %v1602_v40 = vsub.f32 %v3986_v37, %v5136_v31  ;;  %v1483_v25 = vsub.f32 %v3991_v4, %v5137_v34  ;;  %v1490_v56 = vsub.f32 %v3996_v17, %v5138_v7  ;;  %v4110_v31 = vld [vmem:[%s4817_s2 + $0x150] sm:$0xff] }
  0x8a   :  { %v1476_v39 = vsub.f32 %v3976_v55, %v5134_v54  ;;  %v1609_v54 = vsub.f32 %v4001_v14, %v5139_v43  ;;  %v5140_v55 = vand.u32 4294901760, %v4006_v12  ;;  %5141 = vst [vmem:[#allocation24_spill] sm:$0xff] %v4110_v31  ;;  %v5142_v34 = vpack.c.bf16 %v3370_v22, %v3368_v28  ;;  %v5143_v4 = vld [vmem:[#allocation27_spill] sm:$0xff] }
  0x8b   :  { %2779 = vmatpush3.bf16.msra.mxu1 %v5143_v4  ;;  %v1463_v7 = vand.u32 4294901760, %v4035_v35  ;;  %v1582_v37 = vand.u32 4294901760, %v1581_v32  ;;  %v1589_v52 = vand.u32 4294901760, %v1588_v30  ;;  %v1470_v22 = vand.u32 4294901760, %v1469_v61  ;;  %v4132_v35 = vld [vmem:[%s4817_s2 + $0x158] sm:$0xff] }
  0x8c   :  { %v1616_v38 = vsub.f32 %v4006_v12, %v5140_v55  ;;  %2739 = vmatpush3.bf16.msra.mxu0 %v5142_v34  ;;  %v5144_v55 = vpack.c.bf16 %v3397_v48, %v3384_v0  ;;  %v5145_v12 = vld [vmem:[#allocation5_spill] sm:$0xff]  ;;  %v5146_v28 = vand.u32 4294901760, %v4043_v45  ;;  %5147 = vst [vmem:[#allocation27_spill] sm:$0xff] %v4132_v35  ;;  %v1477_v14 = vand.u32 4294901760, %v1476_v39 }
  0x8d   :  { %2813 = vmatprep.subr.bf16.mxu1 %v5145_v12  ;;  %v1596_v43 = vand.u32 4294901760, %v1595_v42  ;;  %v1603_v17 = vand.u32 4294901760, %v1602_v40  ;;  %v4957_v48 = vand.u32 4294901760, %v4110_v31  ;;  %v5148_v0 = vand.u32 4294901760, %v3778_v24 }
  0x8e   :  { %2741 = vmatprep.subr.bf16.mxu0 %v5144_v55  ;;  %v4127_v34 = vsub.f32 %v4043_v45, %v5146_v28  ;;  %v1484_v12 = vand.u32 4294901760, %v1483_v25  ;;  %v1491_v61 = vand.u32 4294901760, %v1490_v56  ;;  %v1610_v32 = vand.u32 4294901760, %v1609_v54  ;;  %v117_v45 = vld [vmem:[%s4816_s1 + $0xb0] sm:$0xff] }
  0x8f   :  { %1048 = vmatmul.mubr.f32.vlgmr.msra.gmra.mrb[2].mxu1 %v5148_v0  ;;  %v1617_v30 = vand.u32 4294901760, %v1616_v38  ;;  %v5149_v55 = vpack.c.bf16 %v5009_v49, %v5008_v6  ;;  %v5150_v28 = vand.u32 4294901760, %v4059_v29  ;;  %v5151_v42 = vand.u32 4294901760, %v4064_v21  ;;  %v4156_v6 = vld [vmem:[%s4817_s2 + $0x1e0] sm:$0xff] }
  0x90   :  { %2815 = vmatpush3.bf16.msra.mxu1 %v5059_v2  ;;  %v5152_v0 = vand.u32 4294901760, %v4082_v23  ;;  %v4956_v56 = vand.u32 4294901760, %v4132_v35  ;;  %5153 = vst [vmem:[#allocation5_spill] sm:$0xff] %v4156_v6  ;;  %v5154_v49 = vpack.c.bf16 %v5011_v5, %v5010_v27  ;;  %v5155_v2 = vand.u32 4294901760, %v3943_v60  ;;  %v42_v27 = vld [vmem:[%s4815_s0 + $0x18] sm:$0xff]  ;;  %1318 = vmatprep.mubr.f32.mxu1 %v3746_v16 }
  0x91   :  { %2743 = vmatpush3.bf16.msra.mxu0 %v5149_v55  ;;  %v1497_v39 = vsub.f32 %v4059_v29, %v5150_v28  ;;  %v1504_v40 = vsub.f32 %v4064_v21, %v5151_v42  ;;  %2817 = vmatprep.subr.bf16.mxu1 %v5061_v62  ;;  %v4166_v38 = vpack.c.bf16 %v1463_v7, %v1456_v44  ;;  %v5156_v55 = vand.u32 4294901760, %v3862_v13  ;;  %v46_v5 = vld [vmem:[%s4815_s0 + $0x38] sm:$0xff] }
  0x92   :  { %v4150_v25 = vsub.f32 %v4082_v23, %v5152_v0  ;;  %2745 = vmatprep.subr.bf16.mxu0 %v5154_v49  ;;  %v4164_v54 = vpack.c.bf16 %v1575_v59, %v5155_v2  ;;  %v5157_v28 = vand.u32 4294901760, %v3867_v19  ;;  %v4958_v0 = vand.u32 4294901760, %v4127_v34  ;;  %v50_v7 = vld [vmem:[%s4815_s0 + $0x58] sm:$0xff]  ;;  %v4221_v2 = vld [vmem:[%s4817_s2 + $0x160] sm:$0xff] }
  0x93   :  { %v4182_v62 = vpack.c.bf16 %v1589_v52, %v1582_v37  ;;  %v4184_v60 = vpack.c.bf16 %v1477_v14, %v1470_v22  ;;  %v5159_v13 = vand.u32 4294901760, %v3878_v63  ;;  %v5160_v19 = vand.u32 4294901760, %v3883_v51  ;;  %v70_v14 = vld [vmem:[%s4815_s0 + $0xf8] sm:$0xff]  ;;  %v4215_v22 = vld [vmem:[%s4817_s2 + $0x1e8] sm:$0xff]  ;;  %5164 = vst [vmem:[#allocation62_spill] sm:$0xff] %v4221_v2 }
  0x94   :  { %v4172_v42 = vpack.c.bf16 %v5157_v28, %v5156_v55  ;;  %v4195_v44 = vsub.f32 %v4110_v31, %v4957_v48  ;;  %v74_v63 = vld [vmem:[%s4815_s0 + $0x118] sm:$0xff]  ;;  %v4206_v51 = vpack.c.bf16 %v1603_v17, %v1596_v43  ;;  %v4208_v52 = vpack.c.bf16 %v1491_v61, %v1484_v12  ;;  %5163 = vst [vmem:[#allocation61_spill] sm:$0xff] %v4215_v22 }
  0x95   :  { %v4190_v59 = vpack.c.bf16 %v5160_v19, %v5159_v13  ;;  %v4210_v37 = vpack.c.bf16 %v1617_v30, %v1610_v32  ;;  %v4959_v49 = vand.u32 4294901760, %v4156_v6  ;;  %v98_v17 = vld [vmem:[%s4816_s1 + $0x18] sm:$0xff]  ;;  %v5165_v43 = vpack.c.bf16 %v5013_v26, %v5012_v8  ;;  %2819 = vmatpush3.bf16.msra.mxu1 %v5062_v46 }
  0x96   :  { %5158 = vst [vmem:[#allocation58_spill] sm:$0xff] %v4172_v42  ;;  %v1498_v12 = vand.u32 4294901760, %v1497_v39  ;;  %v1505_v61 = vand.u32 4294901760, %v1504_v40  ;;  %v4233_v32 = vsub.f32 %v4132_v35, %v4956_v56  ;;  %v4960_v30 = vand.u32 4294901760, %v4150_v25  ;;  %v78_v55 = vld [vmem:[%s4815_s0 + $0x138] sm:$0xff] }
  0x97   :  { %5161 = vst [vmem:[#allocation59_spill] sm:$0xff] %v4190_v59  ;;  %5162 = vst [vmem:[#allocation60_spill] sm:$0xff] %v4210_v37  ;;  %2747 = vmatpush3.bf16.msra.mxu0 %v5165_v43  ;;  %v102_v8 = vld [vmem:[%s4816_s1 + $0x38] sm:$0xff]  ;;  %v4250_v39 = vsub.f32 %v4127_v34, %v4958_v0  ;;  %v126_v28 = vmul.f32 %v98_v17, %v42_v27  ;;  %v154_v48 = vmul.f32 %v98_v17, %v70_v14 }
  0x98   :  { %v106_v26 = vld [vmem:[%s4816_s1 + $0x58] sm:$0xff]  ;;  %2781 = vmatprep.subr.bf16.mxu0 %v3840_v53  ;;  %v130_v13 = vmul.f32 %v102_v8, %v46_v5  ;;  %v4268_v27 = vsub.f32 %v4156_v6, %v4959_v49  ;;  %v158_v43 = vmul.f32 %v102_v8, %v74_v63  ;;  %v4283_v17 = vsub.f32 %v4150_v25, %v4960_v30 }
  0x99   :  { %v5166_v46 = vld [vmem:[#allocation11_spill] sm:$0xff]  ;;  %v134_v56 = vmul.f32 %v106_v26, %v50_v7  ;;  %v162_v19 = vmul.f32 %v106_v26, %v78_v55  ;;  %v5167_v14 = vld [vmem:[#allocation12_spill] sm:$0xff]  ;;  %v5171_v6 = vand.u32 4294901760, %v4215_v22 }
  0x9a   :  { %2821 = vmatprep.subr.bf16.mxu1 %v5166_v46  ;;  %v54_v40 = vld [vmem:[%s4815_s0 + $0x78] sm:$0xff]  ;;  %940 = vmatmul.mubr.f32.vlgmr.msra.gmra.mrb[2].mxu0 %v3778_v24  ;;  %v4278_v24 = vpack.c.bf16 %v1505_v61, %v1498_v12  ;;  %v5169_v12 = vld [vmem:[#allocation13_spill] sm:$0xff]  ;;  %v271_v30 = vadd.f32 %v158_v43, %v154_v48  ;;  %v5173_v48 = vand.u32 4294901760, %v4221_v2 }
  0x9b   :  { %v82_v53 = vld [vmem:[%s4815_s0 + $0x158] sm:$0xff]  ;;  %2783 = vmatpush3.bf16.msra.mxu0 %v3846_v58  ;;  %2823 = vmatpush3.bf16.msra.mxu1 %v5167_v14  ;;  %v219_v14 = vadd.f32 %v130_v13, %v126_v28  ;;  %v4315_v35 = vsub.f32 %v4215_v22, %v5171_v6  ;;  %v41_v13 = vld [vmem:[%s4815_s0 + $0x10] sm:$0xff] }
  0x9c   :  { %v110_v46 = vld [vmem:[%s4816_s1 + $0x78] sm:$0xff]  ;;  %5168 = vst [vmem:[#allocation11_spill] sm:$0xff] %v4278_v24  ;;  %2785 = vmatprep.subr.bf16.mxu0 %v3852_v15  ;;  %2825 = vmatprep.subr.bf16.mxu1 %v5169_v12  ;;  %v5170_v15 = vand.u32 4294901760, %v4195_v44  ;;  %v45_v12 = vld [vmem:[%s4815_s0 + $0x30] sm:$0xff] }
  0x9d   :  { %v58_v5 = vld [vmem:[%s4815_s0 + $0x98] sm:$0xff]  ;;  %v138_v63 = vmul.f32 %v110_v46, %v54_v40  ;;  %v166_v26 = vmul.f32 %v110_v46, %v82_v53  ;;  %1214 = vmatprep.mubr.f32.mxu0 %v3746_v16  ;;  %v4320_v53 = vld [vmem:[%s4817_s2 + $0x168] sm:$0xff]  ;;  %v4325_v16 = vsub.f32 %v4221_v2, %v5173_v48  ;;  %v220_v46 = vadd.f32 %v219_v14, %v134_v56  ;;  %v69_v48 = vld [vmem:[%s4815_s0 + $0xf0] sm:$0xff] }
  0x9e   :  { %v86_v0 = vld [vmem:[%s4815_s0 + $0x178] sm:$0xff]  ;;  %v4309_v40 = vsub.f32 %v4195_v44, %v5170_v15  ;;  %5172 = vst [vmem:[#allocation12_spill] sm:$0xff] %v4320_v53  ;;  %v272_v15 = vadd.f32 %v271_v30, %v162_v19  ;;  %v97_v2 = vld [vmem:[%s4816_s1 + $0x10] sm:$0xff] }
  0x9f   :  { %v62_v49 = vld [vmem:[%s4815_s0 + $0xb8] sm:$0xff]  ;;  %v5174_v22 = vld [vmem:[#allocation22_spill] sm:$0xff]  ;;  %2827 = vmatpush3.bf16.msra.mxu1 %v5083_v57  ;;  %v221_v31 = vadd.f32 %v220_v46, %v138_v63 }
  0xa0   :  { %v90_v7 = vld [vmem:[%s4815_s0 + $0x198] sm:$0xff]  ;;  %2787 = vmatpush3.bf16.msra.mxu0 %v5174_v22  ;;  %2829 = vmatprep.subr.bf16.mxu1 %v5088_v33  ;;  %v4367_v33 = vld [vmem:[%s4817_s2 + $0x1f0] sm:$0xff] }
  0xa1   :  { %v114_v58 = vld [vmem:[%s4816_s1 + $0x98] sm:$0xff]  ;;  %v109_v22 = vld [vmem:[%s4816_s1 + $0x70] sm:$0xff] }
  0xa2   :  { %v66_v61 = vld [vmem:[%s4815_s0 + $0xd8] sm:$0x1]  ;;  %v142_v6 = vmul.f32 %v114_v58, %v58_v5  ;;  %v170_v43 = vmul.f32 %v114_v58, %v86_v0  ;;  %v73_v5 = vld [vmem:[%s4815_s0 + $0x110] sm:$0xff]  ;;  %v273_v0 = vadd.f32 %v272_v15, %v166_v26  ;;  %v153_v26 = vmul.f32 %v97_v2, %v69_v48 }
  0xa3   :  { %v94_v55 = vld [vmem:[%s4815_s0 + $0x1b8] sm:$0x1]  ;;  %v101_v58 = vld [vmem:[%s4816_s1 + $0x30] sm:$0xff]  ;;  %2831 = vmatpush3.bf16.msra.mxu1 %v5091_v10 }
  0xa4   :  { %v122_v8 = vld [vmem:[%s4816_s1 + $0xd8] sm:$0x1]  ;;  %v129_v63 = vmul.f32 %v101_v58, %v45_v12  ;;  %v222_v46 = vadd.f32 %v221_v31, %v142_v6  ;;  %v274_v15 = vadd.f32 %v273_v0, %v170_v43  ;;  %v157_v23 = vmul.f32 %v101_v58, %v73_v5  ;;  %v57_v12 = vld [vmem:[%s4815_s0 + $0x90] sm:$0xff]  ;;  %2833 = vmatprep.subr.bf16.mxu1 %v5096_v47 }
  0xa5   :  { %v118_v28 = vld [vmem:[%s4816_s1 + $0xb8] sm:$0xff]  ;;  %v150_v30 = vmul.f32 %v122_v8, %v66_v61  ;;  %v178_v19 = vmul.f32 %v122_v8, %v94_v55  ;;  %v77_v61 = vld [vmem:[%s4815_s0 + $0x130] sm:$0xff]  ;;  %v5178_v0 = vand.u32 4294901760, %v4320_v53 }
  0xa6   :  { %v146_v56 = vmul.f32 %v118_v28, %v62_v49  ;;  %v5175_v14 = vld [vmem:[#allocation23_spill] sm:$0xff]  ;;  %v174_v57 = vmul.f32 %v118_v28, %v90_v7  ;;  %v125_v7 = vmul.f32 %v97_v2, %v41_v13  ;;  %v5176_v13 = vld [vmem:[#allocation25_spill] sm:$0xff]  ;;  %v5177_v48 = vld [vmem:[#allocation26_spill] sm:$0xff] }
  0xa7   :  { %2789 = vmatprep.subr.bf16.mxu0 %v5175_v14  ;;  %v49_v49 = vld [vmem:[%s4815_s0 + $0x50] sm:$0xff]  ;;  %v224_v31 = vsel %vm184_vm0, %v150_v30, 0.0  ;;  %v276_v2 = vsel %vm184_vm0, %v178_v19, 0.0  ;;  %v4391_v5 = vsub.f32 %v4320_v53, %v5178_v0  ;;  %v4396_v10 = vld [vmem:[%s4817_s2 + $0x1f8] sm:$0xff]  ;;  %2835 = vmatpush3.bf16.msra.mxu1 %v5116_v9 }
  0xa8   :  { %v105_v55 = vld [vmem:[%s4816_s1 + $0x50] sm:$0xff]  ;;  %2791 = vmatpush3.bf16.msra.mxu0 %v5176_v13  ;;  %v223_v19 = vadd.f32 %v222_v46, %v146_v56  ;;  %v275_v58 = vadd.f32 %v274_v15, %v174_v57  ;;  %v206_v15 = vadd.f32 %v129_v63, %v125_v7  ;;  %v258_v13 = vadd.f32 %v157_v23, %v153_v26  ;;  %v4435_v7 = vld [vmem:[%s4817_s2 + $0x178] sm:$0xff] }
  0xa9   :  { %v53_v14 = vld [vmem:[%s4815_s0 + $0x70] sm:$0xff]  ;;  %v133_v6 = vmul.f32 %v105_v55, %v49_v49  ;;  %v161_v43 = vmul.f32 %v105_v55, %v77_v61  ;;  %2793 = vmatprep.subr.bf16.mxu0 %v5177_v48  ;;  %2837 = vmatprep.subr.bf16.mxu1 %v5119_v36  ;;  %v4971_v42 = vand.u32 4294901760, %v4435_v7  ;;  %v5182_v36 = vand.u32 4294901760, %v4367_v33 }
  0xaa   :  { %v81_v8 = vld [vmem:[%s4815_s0 + $0x150] sm:$0xff]  ;;  %v137_v57 = vmul.f32 %v109_v22, %v53_v14  ;;  %v225_v0 = vadd.f32 %v224_v31, %v223_v19  ;;  %v277_v28 = vadd.f32 %v276_v2, %v275_v58  ;;  %v5180_v2 = vld [vmem:[#allocation33_spill] sm:$0xff] }
  0xab   :  { %v85_v49 = vld [vmem:[%s4815_s0 + $0x170] sm:$0xff]  ;;  %v165_v46 = vmul.f32 %v109_v22, %v81_v8  ;;  %v5179_v22 = vld [vmem:[#allocation28_spill] sm:$0xff]  ;;  %v207_v26 = vadd.f32 %v206_v15, %v133_v6  ;;  %v259_v31 = vadd.f32 %v258_v13, %v161_v43  ;;  %2839 = vmatpush3.bf16.msra.mxu1 %v5124_v41  ;;  %v4446_v43 = vsub.f32 %v4367_v33, %v5182_v36 }
  0xac   :  { %v113_v47 = vld [vmem:[%s4816_s1 + $0x90] sm:$0xff]  ;;  %2795 = vmatpush3.bf16.msra.mxu0 %v5179_v22  ;;  %v226_v9 = vrot.slane %v225_v0, 4  ;;  %2841 = vmatprep.subr.bf16.mxu1 %v5129_v1  ;;  %v5185_v41 = vand.u32 4294901760, %v4396_v10 }
  0xad   :  { %v65_v61 = vld [vmem:[%s4815_s0 + $0xd0] sm:$0x1]  ;;  %v141_v14 = vmul.f32 %v113_v47, %v57_v12  ;;  %v169_v63 = vmul.f32 %v113_v47, %v85_v49  ;;  %2797 = vmatprep.subr.bf16.mxu0 %v5180_v2  ;;  %v278_v12 = vrot.slane %v277_v28, 4  ;;  %v208_v23 = vadd.f32 %v207_v26, %v137_v57  ;;  %v5183_v47 = vld [vmem:[#allocation29_spill] sm:$0xff] }
  0xae   :  { %v93_v55 = vld [vmem:[%s4815_s0 + $0x1b0] sm:$0x1]  ;;  %v260_v59 = vadd.f32 %v259_v31, %v165_v46  ;;  %v227_v37 = vadd.f32 %v226_v9, %v225_v0  ;;  %v4456_v46 = vsub.f32 %v4396_v10, %v5185_v41  ;;  %v4459_v0 = vsub.s32 2, %v5183_v47 }
  0xaf   :  { %v121_v56 = vld [vmem:[%s4816_s1 + $0xd0] sm:$0x1]  ;;  %v279_v49 = vadd.f32 %v278_v12, %v277_v28  ;;  %2843 = vmatpush3.bf16.msra.mxu1 %v5143_v4  ;;  %v5191_v12 = vld [vmem:[#allocation37_spill] sm:$0xff] }
  0xb0   :  { %v61_v30 = vld [vmem:[%s4815_s0 + $0xb0] sm:$0xff]  ;;  %v149_v19 = vmul.f32 %v121_v56, %v65_v61  ;;  %v177_v58 = vmul.f32 %v121_v56, %v93_v55  ;;  %v228_v55 = vrot.slane %v227_v37, 2  ;;  %5186 = vst [vmem:[#allocation13_spill] sm:$0xff] %v4456_v46  ;;  %2877 = vmatprep.subr.bf16.mxu1 %v3894_v50 }
  0xb1   :  { %v89_v53 = vld [vmem:[%s4815_s0 + $0x190] sm:$0xff]  ;;  %v145_v22 = vmul.f32 %v117_v45, %v61_v30  ;;  %v305_v30 = vsub.s32 3, %v5183_v47  ;;  %v280_v56 = vrot.slane %v279_v49, 2 }
  0xb2   :  { %v4430_v8 = vld [vmem:[%s4817_s2 + $0x170] sm:$0xff]  ;;  %v173_v48 = vmul.f32 %v117_v45, %v89_v53  ;;  %v209_v45 = vadd.f32 %v208_v23, %v141_v14  ;;  %v261_v53 = vadd.f32 %v260_v59, %v169_v63  ;;  %v211_v28 = vsel %vm184_vm0, %v149_v19, 0.0  ;;  %v5189_v63 = vld [vmem:[#allocation36_spill] sm:$0xff] }
  0xb3   :  { %v4972_v24 = vand.u32 4294901760, %v4430_v8  ;;  %v5181_v6 = vld [vmem:[#allocation34_spill] sm:$0xff]  ;;  %v5184_v61 = vld [vmem:[#allocation35_spill] sm:$0xff]  ;;  %v263_v57 = vsel %vm184_vm0, %v177_v58, 0.0  ;;  %v4469_v59 = vsub.f32 %v4435_v7, %v4971_v42  ;;  %v229_v14 = vadd.f32 %v228_v55, %v227_v37  ;;  %v5193_v37 = vld [vmem:[#allocation32_spill] sm:$0xff] }
  0xb4   :  { %2799 = vmatpush3.bf16.msra.mxu0 %v5181_v6  ;;  %v210_v15 = vadd.f32 %v209_v45, %v145_v22  ;;  %v262_v13 = vadd.f32 %v261_v53, %v173_v48  ;;  %v281_v23 = vadd.f32 %v280_v56, %v279_v49  ;;  %v5190_v26 = vld [vmem:[#allocation30_spill] sm:$0xff]  ;;  %v5192_v22 = vld [vmem:[#allocation31_spill] sm:$0xff]  ;;  %v365_v49 = vrot.slane %v5193_v37, %v305_v30  ;;  %v5214_v48 = vld [vmem:[#allocation52_spill] sm:$0xff] }
  0xb5   :  { %2801 = vmatprep.subr.bf16.mxu0 %v5184_v61  ;;  %v4464_v1 = vsub.f32 %v4430_v8, %v4972_v24  ;;  %5188 = vst [vmem:[#allocation23_spill] sm:$0xff] %v4469_v59  ;;  %v306_v31 = vrot.slane %v5190_v26, %v305_v30  ;;  %v230_v19 = vrot.slane %v229_v14, 1  ;;  %v335_v6 = vrot.slane %v5192_v22, %v305_v30  ;;  %v5197_v55 = vld [vmem:[#allocation43_spill] sm:$0xff] }
  0xb6   :  { %v212_v2 = vadd.f32 %v211_v28, %v210_v15  ;;  %v264_v9 = vadd.f32 %v263_v57, %v262_v13  ;;  %v282_v58 = vrot.slane %v281_v23, 1  ;;  %v4481_v4 = vrot.slane %v5190_v26, %v4459_v0  ;;  %1320 = vmatmul.mubr.f32.vlgmr.msra.gmra.mrb[4].mxu1 %v5197_v55  ;;  %v5199_v57 = vld [vmem:[#allocation15_spill] sm:$0xff]  ;;  %v5203_v13 = vld [vmem:[#allocation17_spill] sm:$0xff] }
  0xb7   :  { %5187 = vst [vmem:[#allocation22_spill] sm:$0xff] %v4464_v1  ;;  %v5194_v45 = vand.u32 4294901760, %v3825_v18  ;;  %v5195_v53 = vand.u32 4294901760, %v3896_v20  ;;  %v231_v50 = vadd.f32 %v230_v19, %v229_v14  ;;  %v5198_v28 = vand.u32 4294901760, %v3918_v3  ;;  %v5208_v19 = vld [vmem:[#allocation48_spill] sm:$0xff]  ;;  %v5210_v42 = vld [vmem:[#allocation51_spill] sm:$0xff] }
  0xb8   :  { %2803 = vmatpush3.bf16.msra.mxu0 %v5189_v63  ;;  %v213_v36 = vrot.slane %v212_v2, 4  ;;  %v265_v47 = vrot.slane %v264_v9, 4  ;;  %v283_v56 = vadd.f32 %v282_v58, %v281_v23  ;;  %v5200_v30 = vand.u32 4294901760, %v5199_v57 }
  0xb9   :  { %2805 = vmatprep.subr.bf16.mxu0 %v5191_v12  ;;  %v4487_v61 = vpack.c.bf16 %v5195_v53, %v5194_v45  ;;  %v5202_v15 = vand.u32 4294901760, %v3952_v11  ;;  %v5204_v63 = vand.u32 4294901760, %v5203_v13  ;;  %v5206_v12 = vld [vmem:[#allocation38_spill] sm:$0xff]  ;;  %v5207_v45 = vld [vmem:[#allocation16_spill] sm:$0xff]  ;;  %v5209_v58 = vand.u32 4294901760, %v5208_v19 }
  0xba   :  { %v4494_v41 = vpack.c.bf16 %v5200_v30, %v5198_v28  ;;  %2879 = vmatpush3.bf16.msra.mxu1 %v5207_v45  ;;  %v214_v14 = vadd.f32 %v213_v36, %v212_v2  ;;  %v266_v23 = vadd.f32 %v265_v47, %v264_v9  ;;  %v5211_v24 = vand.u32 4294901760, %v5210_v42  ;;  %v5213_v30 = vld [vmem:[#allocation39_spill] sm:$0xff]  ;;  %v5219_v47 = vld [vmem:[#allocation54_spill] sm:$0xff] }
  0xbb   :  { %5196 = vst [vmem:[#allocation25_spill] sm:$0xff] %v4487_v61  ;;  %v4500_v26 = vpack.c.bf16 %v5204_v63, %v5202_v15  ;;  %2881 = vmatprep.subr.bf16.mxu1 %v4164_v54  ;;  %v1657_v15 = vand.u32 4294901760, %v4456_v46  ;;  %v314_v63 = vsub.f32 %v231_v50, %v306_v31  ;;  %v5215_v45 = vand.u32 4294901760, %v5214_v48  ;;  %v5226_v61 = vld [vmem:[#allocation57_spill] sm:$0xff] }
  0xbc   :  { %5201 = vst [vmem:[#allocation26_spill] sm:$0xff] %v4494_v41  ;;  %2807 = vmatpush3.bf16.msra.mxu0 %v5206_v12  ;;  %v4509_v28 = vpack.c.bf16 %v5211_v24, %v5209_v58  ;;  %v318_v12 = vsub.f32 %v283_v56, %v306_v31  ;;  %v215_v9 = vrot.slane %v214_v14, 2  ;;  %v267_v36 = vrot.slane %v266_v23, 2  ;;  %v5221_v24 = vld [vmem:[#allocation55_spill] sm:$0xff] }
  0xbd   :  { %5205 = vst [vmem:[#allocation28_spill] sm:$0xff] %v4500_v26  ;;  %2809 = vmatprep.subr.bf16.mxu0 %v5213_v30  ;;  %v5216_v26 = vld [vmem:[#allocation53_spill] sm:$0xff]  ;;  %v5220_v41 = vand.u32 4294901760, %v5219_v47  ;;  %v5222_v58 = vand.u32 4294901760, %v5221_v24  ;;  %v5224_v30 = vld [vmem:[#allocation56_spill] sm:$0xff]  ;;  %v5227_v42 = vand.u32 4294901760, %v5226_v61  ;;  %v343_v31 = vmul.f32 %v335_v6, %v314_v63 }
  0xbe   :  { %5212 = vst [vmem:[#allocation33_spill] sm:$0xff] %v4509_v28  ;;  %v5217_v53 = vand.u32 4294901760, %v5216_v26  ;;  %v5225_v54 = vand.u32 4294901760, %v5224_v30  ;;  %v347_v56 = vmul.f32 %v335_v6, %v318_v12  ;;  %v5229_v26 = vand.u32 4294901760, %v4059_v29  ;;  %2883 = vmatpush3.bf16.msra.mxu1 %v4166_v38 }
  0xbf   :  { %v4524_v28 = vpack.c.bf16 %v5222_v58, %v5220_v41  ;;  %v5233_v24 = vand.u32 4294901760, %v4150_v25  ;;  %v5235_v58 = vld [vmem:[#allocation40_spill] sm:$0xff]  ;;  %v216_v63 = vadd.f32 %v215_v9, %v214_v14  ;;  %v268_v6 = vadd.f32 %v267_v36, %v266_v23  ;;  %2885 = vmatprep.subr.bf16.mxu1 %v4182_v62 }
  0xc0   :  { %v4518_v2 = vpack.c.bf16 %v5217_v53, %v5215_v45  ;;  %v4530_v50 = vpack.c.bf16 %v5227_v42, %v5225_v54  ;;  %v5230_v53 = vand.u32 4294901760, %v4064_v21  ;;  %2811 = vmatpush3.bf16.msra.mxu0 %v5235_v58  ;;  %v1538_v42 = vand.u32 4294901760, %v4464_v1 }
  0xc1   :  { %5223 = vst [vmem:[#allocation29_spill] sm:$0xff] %v4524_v28  ;;  %v5236_v12 = vand.u32 4294901760, %v4195_v44  ;;  %v5237_v54 = vand.u32 4294901760, %v4233_v32  ;;  %v377_v58 = vadd.f32 %v365_v49, %v347_v56  ;;  %v5240_v38 = vand.u32 4294901760, %v4268_v27  ;;  %v5266_v28 = vld [vmem:[#allocation58_spill] sm:$0xff] }
  0xc2   :  { %5218 = vst [vmem:[#allocation34_spill] sm:$0xff] %v4518_v2  ;;  %5228 = vst [vmem:[#allocation35_spill] sm:$0xff] %v4530_v50  ;;  %v4536_v45 = vpack.c.bf16 %v5230_v53, %v5229_v26  ;;  %v5232_v2 = vand.u32 4294901760, %v4127_v34  ;;  %v5239_v53 = vld [vmem:[#allocation9_spill] sm:$0xff]  ;;  %v217_v23 = vrot.slane %v216_v63, 1  ;;  %v269_v9 = vrot.slane %v268_v6, 1  ;;  %2887 = vmatpush3.bf16.msra.mxu1 %v4184_v60 }
  0xc3   :  { %v4551_v26 = vpack.c.bf16 %v5237_v54, %v5236_v12  ;;  %2845 = vmatprep.subr.bf16.mxu0 %v5239_v53  ;;  %v5243_v36 = vand.u32 4294901760, %v4325_v16  ;;  %v5244_v12 = vand.u32 4294901760, %v4391_v5  ;;  %v5246_v62 = vand.u32 4294901760, %v4446_v43  ;;  %1216 = vmatmul.mubr.f32.vlgmr.msra.gmra.mrb[4].mxu0 %v5197_v55 }
  0xc4   :  { %5231 = vst [vmem:[#allocation36_spill] sm:$0xff] %v4536_v45  ;;  %v4542_v41 = vpack.c.bf16 %v5233_v24, %v5232_v2  ;;  %v1545_v2 = vand.u32 4294901760, %v4469_v59  ;;  %v373_v24 = vadd.f32 %v365_v49, %v343_v31  ;;  %v1631_v49 = vand.u32 4294901760, %v4283_v17  ;;  %2889 = vmatprep.subr.bf16.mxu1 %v4206_v51 }
  0xc5   :  { %5238 = vst [vmem:[#allocation37_spill] sm:$0xff] %v4551_v26  ;;  %v4566_v54 = vpack.c.bf16 %v5244_v12, %v5243_v36  ;;  %v4570_v26 = vpack.c.bf16 %v1657_v15, %v5246_v62  ;;  %v5248_v31 = vand.u32 4294901760, %v4233_v32  ;;  %v218_v36 = vadd.f32 %v217_v23, %v216_v63 }
  0xc6   :  { %5234 = vst [vmem:[#allocation30_spill] sm:$0xff] %v4542_v41  ;;  %v5241_v41 = vand.u32 4294901760, %v4315_v35  ;;  %v270_v12 = vadd.f32 %v269_v9, %v268_v6  ;;  %v331_v62 = vrot.slane %v5192_v22, %v4459_v0  ;;  %v1512_v17 = vand.u32 4294901760, %v4309_v40  ;;  %2891 = vmatpush3.bf16.msra.mxu1 %v4208_v52 }
  0xc7   :  { %5245 = vst [vmem:[#allocation32_spill] sm:$0xff] %v4566_v54  ;;  %5247 = vst [vmem:[#allocation43_spill] sm:$0xff] %v4570_v26  ;;  %v1518_v56 = vsub.f32 %v4233_v32, %v5248_v31  ;;  %v5251_v26 = vld [vmem:[#allocation6_spill] sm:$0xff]  ;;  %v5252_v55 = vand.u32 4294901760, %v4268_v27  ;;  %v5253_v31 = vand.u32 4294901760, %v4315_v35  ;;  %v313_v22 = vsub.f32 %v218_v36, %v4481_v4 }
  0xc8   :  { %v4560_v14 = vpack.c.bf16 %v5241_v41, %v5240_v38  ;;  %v457_v41 = vrot.slane %v377_v58, 7  ;;  %v4577_v38 = vpack.c.bf16 %v1545_v2, %v1538_v42  ;;  %v317_v6 = vsub.f32 %v270_v12, %v4481_v4 }
  0xc9   :  { %v1637_v58 = vsub.f32 %v4268_v27, %v5252_v55  ;;  %v361_v51 = vrot.slane %v5193_v37, %v4459_v0  ;;  %v5255_v40 = vand.u32 4294901760, %v4250_v39  ;;  %v1519_v9 = vand.u32 4294901760, %v1518_v56  ;;  %v5259_v39 = vld [vmem:[#allocation19_spill] sm:$0xff] }
  0xca   :  { %5242 = vst [vmem:[#allocation31_spill] sm:$0xff] %v4560_v14  ;;  %5249 = vst [vmem:[#allocation15_spill] sm:$0xff] %v4577_v38  ;;  %v5250_v14 = vld [vmem:[#allocation10_spill] sm:$0xff]  ;;  %v1644_v38 = vsub.f32 %v4315_v35, %v5253_v31  ;;  %v458_v60 = vsel %vm451_vm1, %v457_v41, %v373_v24  ;;  %v5256_v55 = vand.u32 4294901760, %v4325_v16  ;;  %v5257_v31 = vand.u32 4294901760, %v4391_v5  ;;  %v5258_v41 = vld [vmem:[#allocation47_spill] sm:$0xff] }
  0xcb   :  { %2847 = vmatpush3.bf16.msra.mxu0 %v5250_v14  ;;  %v4593_v63 = vand.u32 4294901760, %v458_v60  ;;  %v2896_v23 = vpack.c.bf16 %v1631_v49, %v5255_v40  ;;  %v342_v0 = vmul.f32 %v331_v62, %v313_v22  ;;  %v346_v37 = vmul.f32 %v331_v62, %v317_v6  ;;  %v5260_v49 = vld [vmem:[#allocation60_spill] sm:$0xff]  ;;  %v5264_v22 = vld [vmem:[#allocation14_spill] sm:$0xff] }
  0xcc   :  { %2849 = vmatprep.subr.bf16.mxu0 %v5251_v26  ;;  %v1525_v54 = vsub.f32 %v4325_v16, %v5256_v55  ;;  %v1532_v24 = vsub.f32 %v4391_v5, %v5257_v31  ;;  %2893 = vmatprep.subr.bf16.mxu1 %v5260_v49  ;;  %v1638_v56 = vand.u32 4294901760, %v1637_v58  ;;  %v1645_v36 = vand.u32 4294901760, %v1644_v38 }
  0xcd   :  { %5254 = vst [vmem:[#allocation17_spill] sm:$0xff] %v4593_v63  ;;  %v4610_v4 = vsub.f32 %v458_v60, %v4593_v63  ;;  %v5261_v12 = vand.u32 4294901760, %v4446_v43  ;;  %v1658_v55 = vsub.f32 %v4456_v46, %v1657_v15  ;;  %v372_v52 = vadd.f32 %v361_v51, %v342_v0  ;;  %1662 = vmatprep.mubr.f32.mxu1 %v4593_v63  ;;  %v5262_v60 = vld [vmem:[#allocation7_spill] sm:$0xff] }
  0xce   :  { %v376_v45 = vadd.f32 %v361_v51, %v346_v37  ;;  %v5263_v62 = vand.u32 4294901760, %v5262_v60  ;;  %v5265_v6 = vand.u32 4294901760, %v5264_v22  ;;  %v2898_v58 = vpack.c.bf16 %v1519_v9, %v1512_v17  ;;  %v5268_v63 = vld [vmem:[#allocation59_spill] sm:$0xff]  ;;  %v5269_v60 = vld [vmem:[#allocation45_spill] sm:$0xff] }
  0xcf   :  { %2851 = vmatpush3.bf16.msra.mxu0 %v5258_v41  ;;  %v1651_v40 = vsub.f32 %v4446_v43, %v5261_v12  ;;  %v1423_v31 = vand.u32 4294901760, %v4610_v4  ;;  %v1526_v38 = vand.u32 4294901760, %v1525_v54  ;;  %v1533_v49 = vand.u32 4294901760, %v1532_v24  ;;  %v5267_v12 = vld [vmem:[#allocation11_spill] sm:$0xff] }
  0xd0   :  { %2853 = vmatprep.subr.bf16.mxu0 %v5259_v39  ;;  %v4624_v50 = vpack.c.bf16 %v5265_v6, %v5263_v62  ;;  %2895 = vmatpush3.bf16.msra.mxu1 %v5267_v12  ;;  %v1539_v15 = vsub.f32 %v4464_v1, %v1538_v42  ;;  %v1546_v0 = vsub.f32 %v4469_v59, %v1545_v2  ;;  %v455_v37 = vrot.slane %v376_v45, 7  ;;  %v5271_v62 = vld [vmem:[#allocation46_spill] sm:$0xff]  ;;  %v5273_v45 = vld [vmem:[#allocation49_spill] sm:$0xff] }
  0xd1   :  { %v1424_v51 = vsub.f32 %v4610_v4, %v1423_v31  ;;  %v5270_v22 = vand.u32 4294901760, %v5269_v60  ;;  %v5272_v6 = vand.u32 4294901760, %v5271_v62  ;;  %2897 = vmatprep.subr.bf16.mxu1 %v2896_v23  ;;  %v2900_v54 = vpack.c.bf16 %v1645_v36, %v1638_v56  ;;  %v5275_v59 = vld [vmem:[#allocation50_spill] sm:$0xff] }
  0xd2   :  { %v1652_v9 = vand.u32 4294901760, %v1651_v40  ;;  %v1659_v24 = vand.u32 4294901760, %v1658_v55  ;;  %v456_v42 = vsel %vm451_vm1, %v455_v37, %v372_v52  ;;  %v5274_v2 = vand.u32 4294901760, %v5273_v45  ;;  %v5277_v56 = vld [vmem:[#allocation18_spill] sm:$0xff]  ;;  %v5279_v40 = vld [vmem:[#allocation21_spill] sm:$0xff] }
  0xd3   :  { %2855 = vmatpush3.bf16.msra.mxu0 %v5266_v28  ;;  %v4636_v17 = vpack.c.bf16 %v5272_v6, %v5270_v22  ;;  %v1425_v12 = vand.u32 4294901760, %v1424_v51  ;;  %v4639_v1 = vand.u32 4294901760, %v456_v42  ;;  %v5276_v46 = vand.u32 4294901760, %v5275_v59 }
  0xd4   :  { %2857 = vmatprep.subr.bf16.mxu0 %v5268_v63  ;;  %2899 = vmatpush3.bf16.msra.mxu1 %v2898_v58  ;;  %v2902_v22 = vpack.c.bf16 %v1533_v49, %v1526_v38  ;;  %v1540_v62 = vand.u32 4294901760, %v1539_v15  ;;  %v1547_v23 = vand.u32 4294901760, %v1546_v0  ;;  %v5278_v36 = vand.u32 4294901760, %v5277_v56  ;;  %v5283_v58 = vld [vmem:[#allocation27_spill] sm:$0xff]  ;;  %v5285_v0 = vld [vmem:[#allocation5_spill] sm:$0xff] }
  0xd5   :  { %v4646_v60 = vpack.c.bf16 %v5276_v46, %v5274_v2  ;;  %v5280_v55 = vand.u32 4294901760, %v5279_v40  ;;  %2901 = vmatprep.subr.bf16.mxu1 %v2900_v54  ;;  %v2904_v51 = vpack.c.bf16 %v1659_v24, %v1652_v9  ;;  %1426 = vmatprep.mubr.f32.mxu0 %v1425_v12  ;;  %v4656_v37 = vsub.f32 %v456_v42, %v4639_v1  ;;  %v5281_v46 = vld [vmem:[#allocation24_spill] sm:$0xff]  ;;  %v5287_v54 = vld [vmem:[#allocation61_spill] sm:$0xff]  ;;  %v5289_v42 = vld [vmem:[#allocation62_spill] sm:$0xff] }
  0xd6   :  { %v5282_v59 = vand.u32 4294901760, %v5281_v46  ;;  %v5284_v38 = vand.u32 4294901760, %v5283_v58  ;;  %v2906_v15 = vpack.c.bf16 %v1547_v23, %v1540_v62  ;;  %v5286_v6 = vand.u32 4294901760, %v5285_v0  ;;  %v5291_v2 = vld [vmem:[#allocation12_spill] sm:$0xff] }
  0xd7   :  { %2859 = vmatpush3.bf16.msra.mxu0 %v4624_v50  ;;  %v4653_v52 = vpack.c.bf16 %v5280_v55, %v5278_v36  ;;  %v5288_v9 = vand.u32 4294901760, %v5287_v54  ;;  %v1429_v12 = vand.u32 4294901760, %v4656_v37  ;;  %v5290_v45 = vand.u32 4294901760, %v5289_v42  ;;  %v5325_v54 = vld [vmem:[#allocation15_spill] sm:$0xff] }
  0xd8   :  { %2861 = vmatprep.subr.bf16.mxu0 %v4636_v17  ;;  %v4663_v49 = vpack.c.bf16 %v5284_v38, %v5282_v59  ;;  %2903 = vmatpush3.bf16.msra.mxu1 %v2902_v22  ;;  %v5292_v56 = vand.u32 4294901760, %v5291_v2  ;;  %v5293_v22 = vand.u32 4294901760, %v4367_v33  ;;  %v5294_v62 = vand.u32 4294901760, %v4396_v10  ;;  %v5297_v33 = vld [vmem:[#allocation41_spill] sm:$0xff]  ;;  %v5298_v10 = vld [vmem:[#allocation42_spill] sm:$0xff]  ;;  %v5299_v38 = vld [vmem:[#allocation44_spill] sm:$0xff] }
  0xd9   :  { %v4670_v24 = vpack.c.bf16 %v5288_v9, %v5286_v6  ;;  %2905 = vmatprep.subr.bf16.mxu1 %v2904_v51  ;;  %v1430_v40 = vsub.f32 %v4656_v37, %v1429_v12  ;;  %v5295_v55 = vand.u32 4294901760, %v4430_v8  ;;  %v5296_v51 = vand.u32 4294901760, %v4435_v7  ;;  %v5302_v6 = vld [vmem:[#allocation53_spill] sm:$0xff] }
  0xda   :  { %v4678_v36 = vpack.c.bf16 %v5292_v56, %v5290_v45  ;;  %v4685_v23 = vpack.c.bf16 %v5294_v62, %v5293_v22  ;;  %v2908_v59 = vpack.c.bf16 %v5298_v10, %v5297_v33  ;;  %v2912_v7 = vpack.c.bf16 %v3896_v20, %v3825_v18  ;;  %v5301_v18 = vld [vmem:[#allocation51_spill] sm:$0xff] }
  0xdb   :  { %2863 = vmatpush3.bf16.msra.mxu0 %v4646_v60  ;;  %v4695_v46 = vpack.c.bf16 %v5296_v51, %v5295_v55  ;;  %v1431_v58 = vand.u32 4294901760, %v1430_v40  ;;  %v2914_v0 = vpack.c.bf16 %v5199_v57, %v3918_v3  ;;  %v2918_v20 = vpack.c.bf16 %v5301_v18, %v5208_v19  ;;  %v5303_v57 = vld [vmem:[#allocation55_spill] sm:$0xff] }
  0xdc   :  { %2865 = vmatprep.subr.bf16.mxu0 %v4653_v52  ;;  %2907 = vmatpush3.bf16.msra.mxu1 %v2906_v15  ;;  %v5300_v15 = vld [vmem:[#allocation8_spill] sm:$0xff]  ;;  %v2920_v3 = vpack.c.bf16 %v5302_v6, %v5214_v48  ;;  %v2926_v19 = vpack.c.bf16 %v4064_v21, %v4059_v29  ;;  %v2928_v48 = vpack.c.bf16 %v4150_v25, %v4127_v34  ;;  %v5304_v29 = vld [vmem:[#allocation13_spill] sm:$0xff]  ;;  %v5305_v25 = vld [vmem:[#allocation22_spill] sm:$0xff] }
  0xdd   :  { %2941 = vmatprep.subr.bf16.mxu1 %v5239_v53  ;;  %v2910_v8 = vpack.c.bf16 %v5300_v15, %v5299_v38  ;;  %v2934_v21 = vpack.c.bf16 %v4391_v5, %v4325_v16  ;;  %v2936_v34 = vpack.c.bf16 %v5304_v29, %v4446_v43  ;;  %v5309_v5 = vld [vmem:[#allocation17_spill] sm:$0xff]  ;;  %v5310_v43 = vand.u32 4294901760, %v5299_v38 }
  0xdf   :  { %2867 = vmatpush3.bf16.msra.mxu0 %v4663_v49  ;;  %1664 = vmatmul.mubr.f32.vlgmr.msra.gmra.mrb[6].mxu1 %v4639_v1 }
  0xe0   :  { %2869 = vmatprep.subr.bf16.mxu0 %v4670_v24  ;;  %2943 = vmatpush3.bf16.msra.mxu1 %v5250_v14 }
  0xe1   :  { %2945 = vmatprep.subr.bf16.mxu1 %v5251_v26  ;;  %1906 = vmatprep.mubr.f32.mxu1 %v1423_v31  ;;  %v2916_v31 = vpack.c.bf16 %v5203_v13, %v3952_v11  ;;  %v2922_v11 = vpack.c.bf16 %v5303_v57, %v5219_v47  ;;  %v2924_v13 = vpack.c.bf16 %v5226_v61, %v5224_v30  ;;  %v5311_v30 = vand.u32 4294901760, %v5300_v15 }
  0xe2   :  { %v2930_v47 = vpack.c.bf16 %v4233_v32, %v4195_v44  ;;  %v2932_v61 = vpack.c.bf16 %v4315_v35, %v4268_v27  ;;  %v5306_v44 = vld [vmem:[#allocation23_spill] sm:$0xff]  ;;  %v5307_v35 = vand.u32 4294901760, %v5297_v33  ;;  %v5308_v27 = vand.u32 4294901760, %v5298_v10 }
  0xe3   :  { %2871 = vmatpush3.bf16.msra.mxu0 %v4678_v36  ;;  %v2938_v32 = vpack.c.bf16 %v5306_v44, %v5305_v25 }
  0xe4   :  { %2873 = vmatprep.subr.bf16.mxu0 %v4685_v23  ;;  %2947 = vmatpush3.bf16.msra.mxu1 %v5258_v41  ;;  %v2972_v16 = vpack.c.bf16 %v5308_v27, %v5307_v35 }
  0xe5   :  { %2949 = vmatprep.subr.bf16.mxu1 %v5259_v39 }
  0xe7   :  { %2875 = vmatpush3.bf16.msra.mxu0 %v4695_v46 }
  0xe8   :  { %2909 = vmatprep.subr.bf16.mxu0 %v2908_v59  ;;  %2951 = vmatpush3.bf16.msra.mxu1 %v5266_v28 }
  0xe9   :  { %2953 = vmatprep.subr.bf16.mxu1 %v5268_v63 }
  0xea   :  { %1432 = vmatmul.mubr.f32.vlgmr.msra.gmra.mrb[6].mxu0 %v1431_v58 }
  0xeb   :  { %2911 = vmatpush3.bf16.msra.mxu0 %v2910_v8  ;;  %1799 = vmatprep.mubr.f32.mxu0 %v4610_v4  ;;  %v5314_v4 = vld [vmem:[#allocation28_spill] sm:$0xff] }
  0xec   :  { %2913 = vmatprep.subr.bf16.mxu0 %v2912_v7  ;;  %2955 = vmatpush3.bf16.msra.mxu1 %v4624_v50 }
  0xed   :  { %2957 = vmatprep.subr.bf16.mxu1 %v4636_v17 }
  0xef   :  { %2915 = vmatpush3.bf16.msra.mxu0 %v2914_v0 }
  0xf0   :  { %2917 = vmatprep.subr.bf16.mxu0 %v2916_v31  ;;  %2959 = vmatpush3.bf16.msra.mxu1 %v4646_v60 }
  0xf1   :  { %2961 = vmatprep.subr.bf16.mxu1 %v4653_v52 }
  0xf3   :  { %2919 = vmatpush3.bf16.msra.mxu0 %v2918_v20 }
  0xf4   :  { %2921 = vmatprep.subr.bf16.mxu0 %v2920_v3  ;;  %2963 = vmatpush3.bf16.msra.mxu1 %v4663_v49 }
  0xf5   :  { %2965 = vmatprep.subr.bf16.mxu1 %v4670_v24 }
  0xf7   :  { %2923 = vmatpush3.bf16.msra.mxu0 %v2922_v11 }
  0xf8   :  { %2925 = vmatprep.subr.bf16.mxu0 %v2924_v13  ;;  %2967 = vmatpush3.bf16.msra.mxu1 %v4678_v36 }
  0xf9   :  { %2969 = vmatprep.subr.bf16.mxu1 %v4685_v23 }
  0xfb   :  { %2927 = vmatpush3.bf16.msra.mxu0 %v2926_v19 }
  0xfc   :  { %2929 = vmatprep.subr.bf16.mxu0 %v2928_v48  ;;  %2971 = vmatpush3.bf16.msra.mxu1 %v4695_v46 }
  0xfd   :  { %3005 = vmatprep.subr.bf16.mxu1 %v5239_v53  ;;  %v2974_v53 = vpack.c.bf16 %v5311_v30, %v5310_v43 }
  0xff   :  { %2931 = vmatpush3.bf16.msra.mxu0 %v2930_v47  ;;  %1910 = vmatmul.mubr.f32.vlgmr.msra.gmra.mrb[8].mxu1 %v1429_v12 }
 0x100   :  { %2933 = vmatprep.subr.bf16.mxu0 %v2932_v61  ;;  %3007 = vmatpush3.bf16.msra.mxu1 %v5250_v14  ;;  %v5312_v14 = vld [vmem:[#allocation25_spill] sm:$0xff] }
 0x101   :  { %3009 = vmatprep.subr.bf16.mxu1 %v5251_v26  ;;  %2180 = vmatprep.mubr.f32.mxu1 %v5309_v5  ;;  %v5313_v26 = vld [vmem:[#allocation26_spill] sm:$0xff] }
 0x103   :  { %2935 = vmatpush3.bf16.msra.mxu0 %v2934_v21 }
 0x104   :  { %2937 = vmatprep.subr.bf16.mxu0 %v2936_v34  ;;  %3011 = vmatpush3.bf16.msra.mxu1 %v5258_v41  ;;  %v5315_v41 = vld [vmem:[#allocation33_spill] sm:$0xff]  ;;  %v2188_v34 = vld [vmem:[%s4825_s10] sm:$0x1] }
 0x105   :  { %3013 = vmatprep.subr.bf16.mxu1 %v5259_v39  ;;  %v5316_v39 = vld [vmem:[#allocation34_spill] sm:$0xff]  ;;  %v2189_v25 = vadd.f32 1e-05, %v2188_v34 }
 0x107   :  { %2939 = vmatpush3.bf16.msra.mxu0 %v2938_v32  ;;  %3039 = vrsqrt.f32 %v2189_v25 }
 0x108   :  { %2973 = vmatprep.subr.bf16.mxu0 %v2972_v16  ;;  %3015 = vmatpush3.bf16.msra.mxu1 %v5266_v28  ;;  %v5317_v28 = vld [vmem:[#allocation29_spill] sm:$0xff]  ;;  %v2187_v16 = vld [vmem:[%s4822_s7] sm:$0x1]  ;;  %s3041_s7 = scalar_lea.vmem %s2223_s28, 32 }
 0x109   :  { %3017 = vmatprep.subr.bf16.mxu1 %v5268_v63  ;;  %v5318_v63 = vld [vmem:[#allocation35_spill] sm:$0xff]  ;;  %p3042_p0 = scmp.ne.s32.totalorder %s2223_s28, %s3041_s7  ;;  %p3047_p2 = scmp.lt.s32.totalorder %s3041_s7, %s3041_s7 }
 0x10a   :  { %1802 = vmatmul.mubr.f32.vlgmr.msra.gmra.mrb[8].mxu0 %v4656_v37  ;;  %v5323_v37 = vld [vmem:[#allocation32_spill] sm:$0xff] }
 0x10b   :  { %2975 = vmatpush3.bf16.msra.mxu0 %v2974_v53  ;;  %2076 = vmatprep.mubr.f32.mxu0 %v5309_v5  ;;  %p3048_p3 = por %p3047_p2, %p3046_p1 }
 0x10c   :  { %2977 = vmatprep.subr.bf16.mxu0 %v5312_v14  ;;  %3019 = vmatpush3.bf16.msra.mxu1 %v4624_v50  ;;  %v5319_v50 = vld [vmem:[#allocation36_spill] sm:$0xff] }
 0x10d   :  { %3021 = vmatprep.subr.bf16.mxu1 %v4636_v17  ;;  %v5320_v17 = vld [vmem:[#allocation30_spill] sm:$0xff]  ;;  %p3049_p4 = pnand %p3048_p3, %p3042_p0 }
 0x10f   :  { %2979 = vmatpush3.bf16.msra.mxu0 %v5313_v26  ;;  %v2230_v26 = vld [vmem:[%s4824_s9] ss:$0 sm:$0xff] }
 0x110   :  { %2981 = vmatprep.subr.bf16.mxu0 %v5314_v4  ;;  %3023 = vmatpush3.bf16.msra.mxu1 %v4646_v60  ;;  %v5321_v60 = vld [vmem:[#allocation37_spill] sm:$0xff] }
 0x111   :  { %3025 = vmatprep.subr.bf16.mxu1 %v4653_v52  ;;  %v5322_v52 = vld [vmem:[#allocation31_spill] sm:$0xff]  ;;  %v3040_v27 = vpop.eup %3039 }
 0x112   :  { %v2191_v53 = vmul.f32 %v3040_v27, %v2187_v16 }
 0x113   :  { %2983 = vmatpush3.bf16.msra.mxu0 %v5315_v41  ;;  %v5326_v41 = vld [vmem:[#allocation20_spill] sm:$0xff] }
 0x114   :  { %2985 = vmatprep.subr.bf16.mxu0 %v5316_v39  ;;  %3027 = vmatpush3.bf16.msra.mxu1 %v4663_v49  ;;  %v5324_v49 = vld [vmem:[#allocation43_spill] sm:$0xff]  ;;  %v2204_v39 = vrot.slane %v2191_v53, %v5326_v41 }
 0x115   :  { %3029 = vmatprep.subr.bf16.mxu1 %v4670_v24 }
 0x117   :  { %2987 = vmatpush3.bf16.msra.mxu0 %v5317_v28 }
 0x118   :  { %2989 = vmatprep.subr.bf16.mxu0 %v5318_v63  ;;  %3031 = vmatpush3.bf16.msra.mxu1 %v4678_v36  ;;  %v2231_v63 = vld [vmem:[%s4823_s8] ss:$0 sm:$0xff] }
 0x119   :  { %3033 = vmatprep.subr.bf16.mxu1 %v4685_v23 }
 0x11b   :  { %2991 = vmatpush3.bf16.msra.mxu0 %v5319_v50 }
 0x11c   :  { %2993 = vmatprep.subr.bf16.mxu0 %v5320_v17  ;;  %3035 = vmatpush3.bf16.msra.mxu1 %v4695_v46 }
 0x11f   :  { %2995 = vmatpush3.bf16.msra.mxu0 %v5321_v60  ;;  %2182 = vmatmul.mubr.f32.vlgmr.msra.gmra.mrb[10].mxu1 %v4639_v1 }
 0x120   :  { %2997 = vmatprep.subr.bf16.mxu0 %v5322_v52 }
 0x123   :  { %2999 = vmatpush3.bf16.msra.mxu0 %v5323_v37 }
 0x124   :  { %3001 = vmatprep.subr.bf16.mxu0 %v5324_v49 }
 0x127   :  { %3003 = vmatpush3.bf16.msra.mxu0 %v5325_v54 }
 0x12a   :  { %2078 = vmatmul.mubr.f32.vlgmr.msra.gmra.mrb[10].mxu0 %v4639_v1 }
 0x141   :  { %v2299_v9 = vpop.f32.mrb[0].mxu1 }
 0x142   :  { %v2300_v24 = vpop.f32.mrb[1].mxu1 }
 0x143   :  { %v2301_v12 = vadd.f32 %v2300_v24, %v2299_v9 }
 0x149   :  { %v2264_v42 = vpop.f32.mrb[0].mxu0 }
 0x14a   :  { %v2265_v45 = vpop.f32.mrb[1].mxu0 }
 0x14b   :  { %v2266_v2 = vadd.f32 %v2265_v45, %v2264_v42 }
 0x14d   :  { %v804_v56 = vadd.f32 %v2301_v12, %v2266_v2 }
 0x162   :  { %v2369_v36 = vpop.f32.mrb[2].mxu1 }
 0x163   :  { %v2370_v22 = vpop.f32.mrb[3].mxu1 }
 0x164   :  { %v2371_v62 = vadd.f32 %v2370_v22, %v2369_v36 }
 0x16d   :  { %v2334_v23 = vpop.f32.mrb[2].mxu0 }
 0x16e   :  { %v2335_v40 = vpop.f32.mrb[3].mxu0 }
 0x16f   :  { %v2336_v55 = vadd.f32 %v2335_v40, %v2334_v23 }
 0x171   :  { %v942_v51 = vadd.f32 %v2336_v55, %v804_v56 }
 0x173   :  { %v1050_v46 = vadd.f32 %v2371_v62, %v942_v51 }
 0x189   :  { %v2439_v33 = vpop.f32.mrb[4].mxu1 }
 0x18a   :  { %v2440_v10 = vpop.f32.mrb[5].mxu1 }
 0x18b   :  { %v2441_v59 = vadd.f32 %v2440_v10, %v2439_v33 }
 0x196   :  { %v2404_v58 = vpop.f32.mrb[4].mxu0 }
 0x197   :  { %v2405_v1 = vpop.f32.mrb[5].mxu0 }
 0x198   :  { %v2406_v38 = vadd.f32 %v2405_v1, %v2404_v58 }
 0x19a   :  { %v1218_v15 = vadd.f32 %v2406_v38, %v1050_v46 }
 0x19c   :  { %v1322_v8 = vadd.f32 %v2441_v59, %v1218_v15 }
 0x1b2   :  { %v2509_v7 = vpop.f32.mrb[6].mxu1 }
 0x1b3   :  { %v2510_v0 = vpop.f32.mrb[7].mxu1 }
 0x1b4   :  { %v2511_v31 = vadd.f32 %v2510_v0, %v2509_v7 }
 0x1bd   :  { %v2474_v18 = vpop.f32.mrb[6].mxu0 }
 0x1be   :  { %v2475_v20 = vpop.f32.mrb[7].mxu0 }
 0x1bf   :  { %v2476_v6 = vadd.f32 %v2475_v20, %v2474_v18 }
 0x1c1   :  { %v1434_v3 = vadd.f32 %v2476_v6, %v1322_v8 }
 0x1c3   :  { %v1666_v57 = vadd.f32 %v2511_v31, %v1434_v3 }
 0x1d2   :  { %v2579_v11 = vpop.f32.mrb[8].mxu1 }
 0x1d3   :  { %v2580_v13 = vpop.f32.mrb[9].mxu1 }
 0x1d4   :  { %v2581_v19 = vadd.f32 %v2580_v13, %v2579_v11 }
 0x1dd   :  { %v2544_v48 = vpop.f32.mrb[8].mxu0 }
 0x1de   :  { %v2545_v47 = vpop.f32.mrb[9].mxu0 }
 0x1df   :  { %v2546_v61 = vadd.f32 %v2545_v47, %v2544_v48 }
 0x1e1   :  { %v1804_v21 = vadd.f32 %v2546_v61, %v1666_v57 }
 0x1e3   :  { %v1912_v29 = vadd.f32 %v2581_v19, %v1804_v21 }
 0x1f2   :  { %v2649_v44 = vpop.f32.mrb[10].mxu1 }
 0x1f3   :  { %v2650_v32 = vpop.f32.mrb[11].mxu1 }
 0x1f4   :  { %v2651_v35 = vadd.f32 %v2650_v32, %v2649_v44 }
 0x1fd   :  { %v2614_v5 = vpop.f32.mrb[10].mxu0 }
 0x1fe   :  { %v2615_v43 = vpop.f32.mrb[11].mxu0 }
 0x1ff   :  { %v2616_v30 = vadd.f32 %v2615_v43, %v2614_v5 }
 0x201   :  { %v2080_v14 = vadd.f32 %v2616_v30, %v1912_v29 }
 0x203   :  { %v2184_v4 = vadd.f32 %v2651_v35, %v2080_v14 }
 0x205   :  { %v2199_v28 = vsub.f32 %v2184_v4, %v2230_v26 }
 0x207   :  { %v2206_v50 = vmul.f32 %v2204_v39, %v2199_v28 }
 0x209   :  { %v2214_v17 = vadd.f32 %v2231_v63, %v2206_v50 }
 0x20b   :  { %2215 = vst [vmem:[#allocation2] sm:$0x3] %v2214_v17 }
 0x20c   :  { %3052 = shalt.err (!%p3049_p4)
}
 0x20d   :  { %s3053_s30 = scalar_lea.hbm %s4826_s11, 32 }
 0x20e   :  { %p3054_p5 = scmp.ne.s32.totalorder %s4826_s11, %s3053_s30  ;;  %p3057_p6 = scmp.lt.u32.totalorder %s3053_s30, %s4826_s11 }
 0x210   :  { %p3059_p7 = pnand %p3057_p6, %p3054_p5 }
 0x212   :  { %3062 = shalt.err (!%p3059_p7)
}
 0x213   :  { %2225 = dma.vmem_to_hbm [thread:$0]  %s2223_s28, 32, %s4826_s11, [#allocation3]  }
 0x214   :  { %3063 = dma.done.wait [#allocation3], 32  }
 0x215   :  { %3064 = vsyncadd [#allocation3], 4294967264 }
 0x216   :  { %2229 = vsyncpa [#allocation3], 1 }

</bundles_post_ra>
